<compile_context>
chip_gen: v7x
topology: tpu7x:2x2x1
jax: 0.10.0
libtpu: 0.0.40
codegen_flags: <defaults>
</compile_context>

<pallas_src>
import functools

import jax
import jax.numpy as jnp
from jax.experimental import pallas as pl
from jax.experimental.pallas import tpu as pltpu

# ---------------------------------------------------------------------------
# Model hyper-parameters (consistent with the PyTorch module)
# ---------------------------------------------------------------------------
N_FRAMES = 4
N_MELS = 32                      # stft_cfg = dict(use_mel=True, n_mels=32, ...)
INPUT_DIM = N_FRAMES * N_MELS    # 128
H_DIM = 128
Z_DIM = 8
BN_EPS = 1e-3

ENC_LAYERS = 5                   # 5 x (Linear -> BN -> ReLU)
NUM_LAYERS = 10                  # + 4 x (Linear -> BN -> ReLU) + final Linear
TB = 128                         # batch tile (rows per grid step)


# ---------------------------------------------------------------------------
# Pallas kernel: whole MLP on one (TB, 128) batch tile, params in two slabs
# ---------------------------------------------------------------------------
def mlpae_kernel(x_ref, w_ref, b_ref, z_ref, xhat_ref):
    h = x_ref[...]                                   # (TB, 128) f32
    for layer in range(NUM_LAYERS):                  # statically unrolled
        w = w_ref[layer]                             # (128, 128) bf16
        b = b_ref[layer]                             # (1, 128)   f32
        h = jnp.dot(h.astype(jnp.bfloat16), w,
                    preferred_element_type=jnp.float32) + b
        if layer < NUM_LAYERS - 1:                   # final Linear has no ReLU
            h = jnp.maximum(h, 0.0)
        if layer == ENC_LAYERS - 1:                  # end of encoder -> z
            z_ref[...] = h                           # lane-dense (TB, 128)
    xhat_ref[...] = h


# ---------------------------------------------------------------------------
# Wrapper: batch-tiled pallas_call, weight slabs resident across grid steps
# ---------------------------------------------------------------------------
@jax.jit
def mlpae_forward(x, w_slab, b_slab):
    b_in = x.shape[0]
    pad = (-b_in) % TB
    if pad:
        x = jnp.pad(x, ((0, pad), (0, 0)))
    bp = x.shape[0]
    grid = (bp // TB,)

    flops = 2 * bp * H_DIM * H_DIM * NUM_LAYERS
    bytes_accessed = (x.size * 4 + w_slab.size * 2 + b_slab.size * 4
                      + bp * H_DIM * 4 + bp * INPUT_DIM * 4)

    z_pad, x_hat = pl.pallas_call(
        mlpae_kernel,
        out_shape=(
            jax.ShapeDtypeStruct((bp, H_DIM), jnp.float32),      # z (padded lanes)
            jax.ShapeDtypeStruct((bp, INPUT_DIM), jnp.float32),  # reconstruction
        ),
        grid=grid,
        in_specs=[
            pl.BlockSpec((TB, INPUT_DIM), lambda i: (i, 0)),
            pl.BlockSpec((NUM_LAYERS, H_DIM, H_DIM), lambda i: (0, 0, 0)),
            pl.BlockSpec((NUM_LAYERS, 1, H_DIM), lambda i: (0, 0, 0)),
        ],
        out_specs=(
            pl.BlockSpec((TB, H_DIM), lambda i: (i, 0)),
            pl.BlockSpec((TB, INPUT_DIM), lambda i: (i, 0)),
        ),
        compiler_params=pltpu.CompilerParams(
            dimension_semantics=("parallel",)),
        cost_estimate=pl.CostEstimate(
            flops=flops, transcendentals=0, bytes_accessed=bytes_accessed),
    )(x, w_slab, b_slab)

    return {"embedding": z_pad[:b_in, :Z_DIM],
            "reconstructed": x_hat[:b_in]}


# ---------------------------------------------------------------------------
# Deterministic synthetic parameters + BN-folding into weight/bias slabs
# ---------------------------------------------------------------------------
def make_raw_params(key):
    """Per-layer raw (Linear + eval-mode BN) params, PyTorch-like init."""
    dims = ([(INPUT_DIM, H_DIM)] + [(H_DIM, H_DIM)] * 3 + [(H_DIM, Z_DIM)] +
            [(Z_DIM, H_DIM)] + [(H_DIM, H_DIM)] * 3 + [(H_DIM, INPUT_DIM)])
    has_bn = [True] * 9 + [False]

    layers = []
    keys = jax.random.split(key, len(dims))
    for k_i, (din, dout), bn in zip(keys, dims, has_bn):
        kw, kb, kg, kbe, km, kv = jax.random.split(k_i, 6)
        bound = float(din) ** -0.5
        layer = {
            "w": jax.random.uniform(kw, (din, dout), jnp.float32, -bound, bound),
            "b": jax.random.uniform(kb, (dout,), jnp.float32, -bound, bound),
            "bn": bn,
        }
        if bn:
            layer["gamma"] = 1.0 + 0.1 * jax.random.normal(kg, (dout,), jnp.float32)
            layer["beta"] = 0.1 * jax.random.normal(kbe, (dout,), jnp.float32)
            layer["mu"] = 0.1 * jax.random.normal(km, (dout,), jnp.float32)
            layer["var"] = jax.random.uniform(kv, (dout,), jnp.float32, 0.5, 1.5)
        layers.append(layer)
    return layers


def fold_params(layers):
    """Fold eval-mode BN into Linear; pad to 128x128; pack into two slabs."""
    ws, bs = [], []
    for layer in layers:
        w, b = layer["w"], layer["b"]
        if layer["bn"]:
            scale = layer["gamma"] * jax.lax.rsqrt(layer["var"] + BN_EPS)
            w = w * scale[None, :]
            b = (b - layer["mu"]) * scale + layer["beta"]
        din, dout = w.shape
        w = jnp.pad(w, ((0, H_DIM - din), (0, H_DIM - dout)))
        b = jnp.pad(b, (0, H_DIM - dout))
        ws.append(w.astype(jnp.bfloat16))
        bs.append(b.astype(jnp.float32)[None, :])
    return jnp.stack(ws), jnp.stack(bs)       # (10,128,128) bf16, (10,1,128) f32


# ---------------------------------------------------------------------------
# References
# ---------------------------------------------------------------------------
def reference_folded(x, w_slab, b_slab):
    """Same folded/bf16 math as the kernel, in plain JAX."""
    h = x.astype(jnp.float32)
    z = None
    for i in range(NUM_LAYERS):
        h = jnp.dot(h.astype(jnp.bfloat16), w_slab[i],
                    preferred_element_type=jnp.float32) + b_slab[i]
        if i < NUM_LAYERS - 1:
            h = jnp.maximum(h, 0.0)
        if i == ENC_LAYERS - 1:
            z = h
    return z[:, :Z_DIM], h


def reference_full_precision(x, layers):
    """Original module semantics: f32 Linear -> eval-mode BN -> ReLU."""
    h = x.astype(jnp.float32)
    z = None
    for i, layer in enumerate(layers):
        h = h @ layer["w"] + layer["b"]
        if layer["bn"]:
            h = ((h - layer["mu"]) / jnp.sqrt(layer["var"] + BN_EPS)
                 * layer["gamma"] + layer["beta"])
            h = jnp.maximum(h, 0.0)
        if i == ENC_LAYERS - 1:
            z = h
    return z, h


# ---------------------------------------------------------------------------
# Self-test
# ---------------------------------------------------------------------------
if __name__ == "__main__":
    key = jax.random.PRNGKey(0)
    kx, kp = jax.random.split(key)

    BATCH = 256  # two grid steps of TB=128
    x = jax.random.normal(kx, (BATCH, INPUT_DIM), jnp.float32)

    layers = make_raw_params(kp)
    w_slab, b_slab = fold_params(layers)

    out = mlpae_forward(x, w_slab, b_slab)
    jax.block_until_ready(out)

    assert out["embedding"].shape == (BATCH, Z_DIM)
    assert out["reconstructed"].shape == (BATCH, INPUT_DIM)

    # Primary check: kernel matches the identical folded/bf16 computation.
    z_ref, xhat_ref = reference_folded(x, w_slab, b_slab)
    assert jnp.allclose(out["embedding"], z_ref, atol=1e-3, rtol=1e-3)
    assert jnp.allclose(out["reconstructed"], xhat_ref, atol=1e-3, rtol=1e-3)

    # Sanity check: folded bf16 path stays close to full-precision eval-mode
    # module semantics (BN folding is exact algebra; bf16 is the only delta).
    z_fp, xhat_fp = reference_full_precision(x, layers)
    rel_z = jnp.max(jnp.abs(out["embedding"] - z_fp)) / jnp.maximum(
        1.0, jnp.max(jnp.abs(z_fp)))
    rel_x = jnp.max(jnp.abs(out["reconstructed"] - xhat_fp)) / jnp.maximum(
        1.0, jnp.max(jnp.abs(xhat_fp)))
    assert float(rel_z) < 0.1 and float(rel_x) < 0.1

    print("KERNEL_OK")
</pallas_src>

<mosaic_0001>
module attributes {stable_mosaic.version = 11 : i64} {
  func.func @mlpae_kernel(%arg0: i32, %arg1: memref<128x128xf32, #tpu.memory_space<vmem>>, %arg2: memref<10x128x128xbf16, #tpu.memory_space<vmem>>, %arg3: memref<10x1x128xf32, #tpu.memory_space<vmem>>, %arg4: memref<128x128xf32, #tpu.memory_space<vmem>>, %arg5: memref<128x128xf32, #tpu.memory_space<vmem>>) attributes {dimension_semantics = [#tpu.dimension_semantics<parallel>], iteration_bounds = array<i64: 2>, scalar_prefetch = 0 : i64, scratch_operands = 0 : i64, tpu.core_type = #tpu.core_type<tc>, window_params = [{transform_indices = @transform_0, window_bounds = array<i64: 128, 128>}, {pipeline_mode = #tpu.pipeline_mode<synchronous>, transform_indices = @transform_1, window_bounds = array<i64: 10, 128, 128>}, {pipeline_mode = #tpu.pipeline_mode<synchronous>, transform_indices = @transform_2, window_bounds = array<i64: 10, 1, 128>}, {transform_indices = @transform_3, window_bounds = array<i64: 128, 128>}, {transform_indices = @transform_4, window_bounds = array<i64: 128, 128>}]} {
    %c0 = arith.constant 0 : index
    %c0_0 = arith.constant 0 : index
    %0 = vector.load %arg1[%c0, %c0_0] : memref<128x128xf32, #tpu.memory_space<vmem>>, vector<128x128xf32>
    %c0_1 = arith.constant 0 : index
    %c0_2 = arith.constant 0 : index
    %c0_3 = arith.constant 0 : index
    %1 = vector.load %arg2[%c0_1, %c0_2, %c0_3] : memref<10x128x128xbf16, #tpu.memory_space<vmem>>, vector<1x128x128xbf16>
    %2 = vector.shape_cast %1 : vector<1x128x128xbf16> to vector<128x128xbf16>
    %c0_4 = arith.constant 0 : index
    %c0_5 = arith.constant 0 : index
    %c0_6 = arith.constant 0 : index
    %3 = vector.load %arg3[%c0_4, %c0_5, %c0_6] : memref<10x1x128xf32, #tpu.memory_space<vmem>>, vector<1x1x128xf32>
    %4 = vector.shape_cast %3 : vector<1x1x128xf32> to vector<1x128xf32>
    %5 = arith.truncf %0 : vector<128x128xf32> to vector<128x128xbf16>
    %cst = arith.constant dense<0.000000e+00> : vector<128x128xf32>
    %6 = tpu.matmul %5, %2, %cst {dimension_numbers = #tpu.dot_dimension_numbers<[1], [0], [0], [1], [0, 0, 1, 1], [], []>} : vector<128x128xbf16>, vector<128x128xbf16>, vector<128x128xf32> -> vector<128x128xf32>
    %7 = vector.broadcast %4 : vector<1x128xf32> to vector<128x128xf32>
    %8 = arith.addf %6, %7 : vector<128x128xf32>
    %cst_7 = arith.constant 0.000000e+00 : f32
    %9 = vector.broadcast %cst_7 : f32 to vector<128x128xf32>
    %10 = arith.maximumf %8, %9 : vector<128x128xf32>
    %c1 = arith.constant 1 : index
    %c0_8 = arith.constant 0 : index
    %c0_9 = arith.constant 0 : index
    %11 = vector.load %arg2[%c1, %c0_8, %c0_9] : memref<10x128x128xbf16, #tpu.memory_space<vmem>>, vector<1x128x128xbf16>
    %12 = vector.shape_cast %11 : vector<1x128x128xbf16> to vector<128x128xbf16>
    %c1_10 = arith.constant 1 : index
    %c0_11 = arith.constant 0 : index
    %c0_12 = arith.constant 0 : index
    %13 = vector.load %arg3[%c1_10, %c0_11, %c0_12] : memref<10x1x128xf32, #tpu.memory_space<vmem>>, vector<1x1x128xf32>
    %14 = vector.shape_cast %13 : vector<1x1x128xf32> to vector<1x128xf32>
    %15 = arith.truncf %10 : vector<128x128xf32> to vector<128x128xbf16>
    %cst_13 = arith.constant dense<0.000000e+00> : vector<128x128xf32>
    %16 = tpu.matmul %15, %12, %cst_13 {dimension_numbers = #tpu.dot_dimension_numbers<[1], [0], [0], [1], [0, 0, 1, 1], [], []>} : vector<128x128xbf16>, vector<128x128xbf16>, vector<128x128xf32> -> vector<128x128xf32>
    %17 = vector.broadcast %14 : vector<1x128xf32> to vector<128x128xf32>
    %18 = arith.addf %16, %17 : vector<128x128xf32>
    %cst_14 = arith.constant 0.000000e+00 : f32
    %19 = vector.broadcast %cst_14 : f32 to vector<128x128xf32>
    %20 = arith.maximumf %18, %19 : vector<128x128xf32>
    %c2 = arith.constant 2 : index
    %c0_15 = arith.constant 0 : index
    %c0_16 = arith.constant 0 : index
    %21 = vector.load %arg2[%c2, %c0_15, %c0_16] : memref<10x128x128xbf16, #tpu.memory_space<vmem>>, vector<1x128x128xbf16>
    %22 = vector.shape_cast %21 : vector<1x128x128xbf16> to vector<128x128xbf16>
    %c2_17 = arith.constant 2 : index
    %c0_18 = arith.constant 0 : index
    %c0_19 = arith.constant 0 : index
    %23 = vector.load %arg3[%c2_17, %c0_18, %c0_19] : memref<10x1x128xf32, #tpu.memory_space<vmem>>, vector<1x1x128xf32>
    %24 = vector.shape_cast %23 : vector<1x1x128xf32> to vector<1x128xf32>
    %25 = arith.truncf %20 : vector<128x128xf32> to vector<128x128xbf16>
    %cst_20 = arith.constant dense<0.000000e+00> : vector<128x128xf32>
    %26 = tpu.matmul %25, %22, %cst_20 {dimension_numbers = #tpu.dot_dimension_numbers<[1], [0], [0], [1], [0, 0, 1, 1], [], []>} : vector<128x128xbf16>, vector<128x128xbf16>, vector<128x128xf32> -> vector<128x128xf32>
    %27 = vector.broadcast %24 : vector<1x128xf32> to vector<128x128xf32>
    %28 = arith.addf %26, %27 : vector<128x128xf32>
    %cst_21 = arith.constant 0.000000e+00 : f32
    %29 = vector.broadcast %cst_21 : f32 to vector<128x128xf32>
    %30 = arith.maximumf %28, %29 : vector<128x128xf32>
    %c3 = arith.constant 3 : index
    %c0_22 = arith.constant 0 : index
    %c0_23 = arith.constant 0 : index
    %31 = vector.load %arg2[%c3, %c0_22, %c0_23] : memref<10x128x128xbf16, #tpu.memory_space<vmem>>, vector<1x128x128xbf16>
    %32 = vector.shape_cast %31 : vector<1x128x128xbf16> to vector<128x128xbf16>
    %c3_24 = arith.constant 3 : index
    %c0_25 = arith.constant 0 : index
    %c0_26 = arith.constant 0 : index
    %33 = vector.load %arg3[%c3_24, %c0_25, %c0_26] : memref<10x1x128xf32, #tpu.memory_space<vmem>>, vector<1x1x128xf32>
    %34 = vector.shape_cast %33 : vector<1x1x128xf32> to vector<1x128xf32>
    %35 = arith.truncf %30 : vector<128x128xf32> to vector<128x128xbf16>
    %cst_27 = arith.constant dense<0.000000e+00> : vector<128x128xf32>
    %36 = tpu.matmul %35, %32, %cst_27 {dimension_numbers = #tpu.dot_dimension_numbers<[1], [0], [0], [1], [0, 0, 1, 1], [], []>} : vector<128x128xbf16>, vector<128x128xbf16>, vector<128x128xf32> -> vector<128x128xf32>
    %37 = vector.broadcast %34 : vector<1x128xf32> to vector<128x128xf32>
    %38 = arith.addf %36, %37 : vector<128x128xf32>
    %cst_28 = arith.constant 0.000000e+00 : f32
    %39 = vector.broadcast %cst_28 : f32 to vector<128x128xf32>
    %40 = arith.maximumf %38, %39 : vector<128x128xf32>
    %c4 = arith.constant 4 : index
    %c0_29 = arith.constant 0 : index
    %c0_30 = arith.constant 0 : index
    %41 = vector.load %arg2[%c4, %c0_29, %c0_30] : memref<10x128x128xbf16, #tpu.memory_space<vmem>>, vector<1x128x128xbf16>
    %42 = vector.shape_cast %41 : vector<1x128x128xbf16> to vector<128x128xbf16>
    %c4_31 = arith.constant 4 : index
    %c0_32 = arith.constant 0 : index
    %c0_33 = arith.constant 0 : index
    %43 = vector.load %arg3[%c4_31, %c0_32, %c0_33] : memref<10x1x128xf32, #tpu.memory_space<vmem>>, vector<1x1x128xf32>
    %44 = vector.shape_cast %43 : vector<1x1x128xf32> to vector<1x128xf32>
    %45 = arith.truncf %40 : vector<128x128xf32> to vector<128x128xbf16>
    %cst_34 = arith.constant dense<0.000000e+00> : vector<128x128xf32>
    %46 = tpu.matmul %45, %42, %cst_34 {dimension_numbers = #tpu.dot_dimension_numbers<[1], [0], [0], [1], [0, 0, 1, 1], [], []>} : vector<128x128xbf16>, vector<128x128xbf16>, vector<128x128xf32> -> vector<128x128xf32>
    %47 = vector.broadcast %44 : vector<1x128xf32> to vector<128x128xf32>
    %48 = arith.addf %46, %47 : vector<128x128xf32>
    %cst_35 = arith.constant 0.000000e+00 : f32
    %49 = vector.broadcast %cst_35 : f32 to vector<128x128xf32>
    %50 = arith.maximumf %48, %49 : vector<128x128xf32>
    %c0_36 = arith.constant 0 : index
    %c0_37 = arith.constant 0 : index
    %51 = vector.load %arg4[%c0_36, %c0_37] : memref<128x128xf32, #tpu.memory_space<vmem>>, vector<128x128xf32>
    tpu.vector_store %arg4[%c0_36, %c0_37], %50 {strides = array<i32>} : memref<128x128xf32, #tpu.memory_space<vmem>>, vector<128x128xf32>,
    %c5 = arith.constant 5 : index
    %c0_38 = arith.constant 0 : index
    %c0_39 = arith.constant 0 : index
    %52 = vector.load %arg2[%c5, %c0_38, %c0_39] : memref<10x128x128xbf16, #tpu.memory_space<vmem>>, vector<1x128x128xbf16>
    %53 = vector.shape_cast %52 : vector<1x128x128xbf16> to vector<128x128xbf16>
    %c5_40 = arith.constant 5 : index
    %c0_41 = arith.constant 0 : index
    %c0_42 = arith.constant 0 : index
    %54 = vector.load %arg3[%c5_40, %c0_41, %c0_42] : memref<10x1x128xf32, #tpu.memory_space<vmem>>, vector<1x1x128xf32>
    %55 = vector.shape_cast %54 : vector<1x1x128xf32> to vector<1x128xf32>
    %56 = arith.truncf %50 : vector<128x128xf32> to vector<128x128xbf16>
    %cst_43 = arith.constant dense<0.000000e+00> : vector<128x128xf32>
    %57 = tpu.matmul %56, %53, %cst_43 {dimension_numbers = #tpu.dot_dimension_numbers<[1], [0], [0], [1], [0, 0, 1, 1], [], []>} : vector<128x128xbf16>, vector<128x128xbf16>, vector<128x128xf32> -> vector<128x128xf32>
    %58 = vector.broadcast %55 : vector<1x128xf32> to vector<128x128xf32>
    %59 = arith.addf %57, %58 : vector<128x128xf32>
    %cst_44 = arith.constant 0.000000e+00 : f32
    %60 = vector.broadcast %cst_44 : f32 to vector<128x128xf32>
    %61 = arith.maximumf %59, %60 : vector<128x128xf32>
    %c6 = arith.constant 6 : index
    %c0_45 = arith.constant 0 : index
    %c0_46 = arith.constant 0 : index
    %62 = vector.load %arg2[%c6, %c0_45, %c0_46] : memref<10x128x128xbf16, #tpu.memory_space<vmem>>, vector<1x128x128xbf16>
    %63 = vector.shape_cast %62 : vector<1x128x128xbf16> to vector<128x128xbf16>
    %c6_47 = arith.constant 6 : index
    %c0_48 = arith.constant 0 : index
    %c0_49 = arith.constant 0 : index
    %64 = vector.load %arg3[%c6_47, %c0_48, %c0_49] : memref<10x1x128xf32, #tpu.memory_space<vmem>>, vector<1x1x128xf32>
    %65 = vector.shape_cast %64 : vector<1x1x128xf32> to vector<1x128xf32>
    %66 = arith.truncf %61 : vector<128x128xf32> to vector<128x128xbf16>
    %cst_50 = arith.constant dense<0.000000e+00> : vector<128x128xf32>
    %67 = tpu.matmul %66, %63, %cst_50 {dimension_numbers = #tpu.dot_dimension_numbers<[1], [0], [0], [1], [0, 0, 1, 1], [], []>} : vector<128x128xbf16>, vector<128x128xbf16>, vector<128x128xf32> -> vector<128x128xf32>
    %68 = vector.broadcast %65 : vector<1x128xf32> to vector<128x128xf32>
    %69 = arith.addf %67, %68 : vector<128x128xf32>
    %cst_51 = arith.constant 0.000000e+00 : f32
    %70 = vector.broadcast %cst_51 : f32 to vector<128x128xf32>
    %71 = arith.maximumf %69, %70 : vector<128x128xf32>
    %c7 = arith.constant 7 : index
    %c0_52 = arith.constant 0 : index
    %c0_53 = arith.constant 0 : index
    %72 = vector.load %arg2[%c7, %c0_52, %c0_53] : memref<10x128x128xbf16, #tpu.memory_space<vmem>>, vector<1x128x128xbf16>
    %73 = vector.shape_cast %72 : vector<1x128x128xbf16> to vector<128x128xbf16>
    %c7_54 = arith.constant 7 : index
    %c0_55 = arith.constant 0 : index
    %c0_56 = arith.constant 0 : index
    %74 = vector.load %arg3[%c7_54, %c0_55, %c0_56] : memref<10x1x128xf32, #tpu.memory_space<vmem>>, vector<1x1x128xf32>
    %75 = vector.shape_cast %74 : vector<1x1x128xf32> to vector<1x128xf32>
    %76 = arith.truncf %71 : vector<128x128xf32> to vector<128x128xbf16>
    %cst_57 = arith.constant dense<0.000000e+00> : vector<128x128xf32>
    %77 = tpu.matmul %76, %73, %cst_57 {dimension_numbers = #tpu.dot_dimension_numbers<[1], [0], [0], [1], [0, 0, 1, 1], [], []>} : vector<128x128xbf16>, vector<128x128xbf16>, vector<128x128xf32> -> vector<128x128xf32>
    %78 = vector.broadcast %75 : vector<1x128xf32> to vector<128x128xf32>
    %79 = arith.addf %77, %78 : vector<128x128xf32>
    %cst_58 = arith.constant 0.000000e+00 : f32
    %80 = vector.broadcast %cst_58 : f32 to vector<128x128xf32>
    %81 = arith.maximumf %79, %80 : vector<128x128xf32>
    %c8 = arith.constant 8 : index
    %c0_59 = arith.constant 0 : index
    %c0_60 = arith.constant 0 : index
    %82 = vector.load %arg2[%c8, %c0_59, %c0_60] : memref<10x128x128xbf16, #tpu.memory_space<vmem>>, vector<1x128x128xbf16>
    %83 = vector.shape_cast %82 : vector<1x128x128xbf16> to vector<128x128xbf16>
    %c8_61 = arith.constant 8 : index
    %c0_62 = arith.constant 0 : index
    %c0_63 = arith.constant 0 : index
    %84 = vector.load %arg3[%c8_61, %c0_62, %c0_63] : memref<10x1x128xf32, #tpu.memory_space<vmem>>, vector<1x1x128xf32>
    %85 = vector.shape_cast %84 : vector<1x1x128xf32> to vector<1x128xf32>
    %86 = arith.truncf %81 : vector<128x128xf32> to vector<128x128xbf16>
    %cst_64 = arith.constant dense<0.000000e+00> : vector<128x128xf32>
    %87 = tpu.matmul %86, %83, %cst_64 {dimension_numbers = #tpu.dot_dimension_numbers<[1], [0], [0], [1], [0, 0, 1, 1], [], []>} : vector<128x128xbf16>, vector<128x128xbf16>, vector<128x128xf32> -> vector<128x128xf32>
    %88 = vector.broadcast %85 : vector<1x128xf32> to vector<128x128xf32>
    %89 = arith.addf %87, %88 : vector<128x128xf32>
    %cst_65 = arith.constant 0.000000e+00 : f32
    %90 = vector.broadcast %cst_65 : f32 to vector<128x128xf32>
    %91 = arith.maximumf %89, %90 : vector<128x128xf32>
    %c9 = arith.constant 9 : index
    %c0_66 = arith.constant 0 : index
    %c0_67 = arith.constant 0 : index
    %92 = vector.load %arg2[%c9, %c0_66, %c0_67] : memref<10x128x128xbf16, #tpu.memory_space<vmem>>, vector<1x128x128xbf16>
    %93 = vector.shape_cast %92 : vector<1x128x128xbf16> to vector<128x128xbf16>
    %c9_68 = arith.constant 9 : index
    %c0_69 = arith.constant 0 : index
    %c0_70 = arith.constant 0 : index
    %94 = vector.load %arg3[%c9_68, %c0_69, %c0_70] : memref<10x1x128xf32, #tpu.memory_space<vmem>>, vector<1x1x128xf32>
    %95 = vector.shape_cast %94 : vector<1x1x128xf32> to vector<1x128xf32>
    %96 = arith.truncf %91 : vector<128x128xf32> to vector<128x128xbf16>
    %cst_71 = arith.constant dense<0.000000e+00> : vector<128x128xf32>
    %97 = tpu.matmul %96, %93, %cst_71 {dimension_numbers = #tpu.dot_dimension_numbers<[1], [0], [0], [1], [0, 0, 1, 1], [], []>} : vector<128x128xbf16>, vector<128x128xbf16>, vector<128x128xf32> -> vector<128x128xf32>
    %98 = vector.broadcast %95 : vector<1x128xf32> to vector<128x128xf32>
    %99 = arith.addf %97, %98 : vector<128x128xf32>
    %c0_72 = arith.constant 0 : index
    %c0_73 = arith.constant 0 : index
    %100 = vector.load %arg5[%c0_72, %c0_73] : memref<128x128xf32, #tpu.memory_space<vmem>>, vector<128x128xf32>
    tpu.vector_store %arg5[%c0_72, %c0_73], %99 {strides = array<i32>} : memref<128x128xf32, #tpu.memory_space<vmem>>, vector<128x128xf32>,
    return
  }
  func.func @transform_0(%arg0: i32) -> (i32, i32) {
    %c0_i32 = arith.constant 0 : i32
    %c0_i32_0 = arith.constant 0 : i32
    return %arg0, %c0_i32 : i32, i32
  }
  func.func @transform_1(%arg0: i32) -> (i32, i32, i32) {
    %c0_i32 = arith.constant 0 : i32
    %c0_i32_0 = arith.constant 0 : i32
    %c0_i32_1 = arith.constant 0 : i32
    %c0_i32_2 = arith.constant 0 : i32
    return %c0_i32, %c0_i32_0, %c0_i32_1 : i32, i32, i32
  }
  func.func @transform_2(%arg0: i32) -> (i32, i32, i32) {
    %c0_i32 = arith.constant 0 : i32
    %c0_i32_0 = arith.constant 0 : i32
    %c0_i32_1 = arith.constant 0 : i32
    %c0_i32_2 = arith.constant 0 : i32
    return %c0_i32, %c0_i32_0, %c0_i32_1 : i32, i32, i32
  }
  func.func @transform_3(%arg0: i32) -> (i32, i32) {
    %c0_i32 = arith.constant 0 : i32
    %c0_i32_0 = arith.constant 0 : i32
    return %arg0, %c0_i32 : i32, i32
  }
  func.func @transform_4(%arg0: i32) -> (i32, i32) {
    %c0_i32 = arith.constant 0 : i32
    %c0_i32_0 = arith.constant 0 : i32
    return %arg0, %c0_i32 : i32, i32
  }
}

</mosaic_0001>

<bundles_post_ra>
// kernel: mlpae_forward.1
= control target key start
LH: loop header
LB: loop body
LE: loop exit
PB: predicated region body
PF: predicated region fallthrough
CT: control target
= control target key end

     0   :  { %10 = vsyncpa [#allocation3], 0  ;;  %s3629_s0 = inlined_call_operand.hbm [shape: f32[256,128], index: 0, kind: input, shape index: {}]   ;;  %s3630_s1 = inlined_call_operand.hbm [shape: bf16[10,128,128], index: 1, kind: input, shape index: {}]   ;;  %s3631_s2 = inlined_call_operand.hbm [shape: f32[10,1,128], index: 2, kind: input, shape index: {}]   ;;  %s3632_s3 = inlined_call_operand.vmem [shape: f32[256,128], index: 3, kind: output, shape index: {0}]   ;;  %s3633_s4 = inlined_call_operand.hbm [shape: f32[256,128], index: 4, kind: output, shape index: {1}]  }
   0x1   :  { %12 = vsyncpa [#allocation3 + $0x1], 0 }
   0x2   :  { %13 = vsyncpa [#allocation6], 0 }
   0x3   :  { %14 = vsyncpa [#allocation4], 0 }
   0x4   :  { %16 = vsyncpa [#allocation4 + $0x1], 0  ;;  %s3314_s15 = smov 0   ;;  %s3316_s16 = smov 0  }
   0x5   :  { %s3318_s17 = smov 0   ;;  %s3320_s18 = smov 0  }
   0x6 LB: > { %s3335_s19 = sadd.s32 4294967295, %s3275_s18   ;;  %s2372_s20 = sadd.s32 4294967294, %s3275_s18   ;;  %s3275_s18 = sphi %s3320_s18, %s3653_s18   ;;  %s3271_s17 = sphi %s3318_s17, %s3652_s17   ;;  %s3267_s16 = sphi %s3316_s16, %s3651_s16   ;;  %s3263_s15 = sphi %s3314_s15, %s3650_s15  }
   0x7   : > { %p42_p0 = scmp.ne.s32.totalorder %s3267_s16, %s3263_s15  ;;  %p3634_p1 = scmp.eq.s32.totalorder %s3335_s19, 0 }
   0x8   : > { %p140_p3 = scmp.eq.s32.totalorder %s2372_s20, 1  ;;  %p2373_p5 = scmp.ge.s32.totalorder %s3275_s18, 1 }
   0x9   : > { %p3344_p4 = por %p3634_p1, %p42_p0  ;;  %p147_p7 = scmp.lt.s32.totalorder %s3275_s18, 3 }
   0xa   : > { %p3349_p6 = por %p140_p3, %p42_p0  ;;  %s3277_s24 = smov [#allocation5]  }
   0xb   : > { %s3637_s21 = scalar_select %p3344_p4, 1, 0 }
   0xc   : > { %s3638_s22 = scalar_select %p3349_p6, 1, 0 }
   0xd   : > { %p3354_p8 = pnand %p2373_p5, %p147_p7  ;;  %s159_s25 = sshll.u32 %s3277_s24, 4  ;;  %s3358_s25 = int_to_ptr.vmem [resolvable:$true] %s159_s25 }
   0xe   : > { %s3278_s27 = smov [#allocation7]   ;;  %s3119_s5 = scalar_lea.hbm %s3630_s1, 10240 }
   0xf   : > { %p2976_p9 = pneg %p3354_p8  ;;  %s172_s28 = sshll.u32 %s3278_s27, 4  ;;  %s3369_s28 = int_to_ptr.vmem [resolvable:$true] %s172_s28 }
  0x10   : > { %p3120_p12 = scmp.ne.s32.totalorder %s3630_s1, %s3119_s5  ;;  %p3126_p5 = scmp.lt.u32.totalorder %s3119_s5, %s3630_s1 }
  0x11   : > { %p3365_p11 = pnand %p2976_p9, %p3634_p1 }
  0x13   : > { %p3121_p13 = pneg %p3365_p11 }
  0x15   : > { %p3122_p0 = pnand %p3121_p13, %p3120_p12 }
  0x17   : > { %p3123_p3 = pneg %p3122_p0 }
  0x19   : > { %p3128_p7 = pnand %p3126_p5, %p3123_p3 }
  0x1b   : > { %3131 = shalt.err (!%p3128_p7)
}
  0x1c   : > { %s3132_s10 = scalar_lea.vmem %s3358_s25, 10240  ;;  %p3140_p2 = scmp.lt.s32.totalorder %s3358_s25, %s3358_s25 }
  0x1d   : > { %p3133_p9 = scmp.ne.s32.totalorder %s3358_s25, %s3132_s10  ;;  %p3141_p12 = scmp.lt.s32.totalorder %s3132_s10, %s3132_s10 }
  0x1f   : > { %p3135_p10 = pnand %p3133_p9, %p3121_p13  ;;  %p3142_p0 = por %p3141_p12, %p3140_p2 }
  0x21   : > { %p3136_p1 = pneg %p3135_p10 }
  0x23   : > { %p3143_p6 = pnand %p3142_p0, %p3136_p1 }
  0x25   : > { %3146 = shalt.err (!%p3143_p6)
}
  0x26   : > { %s3279_s11 = smov 64   ;;  %s3280_s12 = smov 4  }
  0x27   : > { %2979 = dma.hbm_to_vmem [thread:$0]  (!%p3365_p11), %s3630_s1, 10240, %s3358_s25, [#allocation6], %s3279_s11, %s3279_s11, %s3280_s12  }
  0x28   : > { %s3147_s27 = scalar_lea.hbm %s3631_s2, 160 }
  0x29   : > { %p3148_p2 = scmp.ne.s32.totalorder %s3631_s2, %s3147_s27  ;;  %p3154_p10 = scmp.lt.u32.totalorder %s3147_s27, %s3631_s2 }
  0x2b   : > { %p3150_p1 = pnand %p3148_p2, %p3121_p13 }
  0x2d   : > { %p3151_p6 = pneg %p3150_p1 }
  0x2f   : > { %p3156_p3 = pnand %p3154_p10, %p3151_p6 }
  0x31   : > { %3159 = shalt.err (!%p3156_p3)
}
  0x32   : > { %s3160_s25 = scalar_lea.vmem %s3369_s28, 160  ;;  %p3168_p12 = scmp.lt.s32.totalorder %s3369_s28, %s3369_s28 }
  0x33   : > { %p3161_p5 = scmp.ne.s32.totalorder %s3369_s28, %s3160_s25  ;;  %p3169_p0 = scmp.lt.s32.totalorder %s3160_s25, %s3160_s25 }
  0x35   : > { %p3163_p7 = pnand %p3161_p5, %p3121_p13  ;;  %p3170_p2 = por %p3169_p0, %p3168_p12 }
  0x37   : > { %p3164_p9 = pneg %p3163_p7 }
  0x39   : > { %p3171_p1 = pnand %p3170_p2, %p3164_p9 }
  0x3b   : > { %3174 = shalt.err (!%p3171_p1)
}
  0x3c   : > { %s3281_s7 = smov 16   ;;  %s3282_s8 = smov 1  }
  0x3d   : > { %2982 = dma.hbm_to_vmem [thread:$0]  (!%p3365_p11), %s3631_s2, 160, %s3369_s28, [#allocation6], %s3281_s7, %s3281_s7, %s3282_s8  }
  0x3e   : > { %s3424_s11 = sadd.s32 1, %s3275_s18   ;;  %s29_s13 = sadd.s32 1, %s3271_s17 }
  0x3f   : > { %s26_s12 = ssub.s32 %s3275_s18, %s3424_s11  ;;  %p36_p6 = scmp.ne.s32.totalorder %s3271_s17, %s3267_s16 }
  0x40   : > { %p27_p13 = scmp.eq.s32.totalorder %s26_s12, 0  ;;  %p37_p10 = scmp.eq.s32.totalorder %s3275_s18, 0 }
  0x41   : > { %p3641_p5 = scmp.eq.s32.totalorder %s3335_s19, 1  ;;  %p2993_p9 = scmp.lt.s32.totalorder %s3275_s18, 2 }
  0x42   : > { %s3433_s14 = scalar_select %p27_p13, %s3271_s17, %s29_s13  }
  0x43   : > { %p38_p3 = por %p37_p10, %p36_p6  ;;  %p3437_p7 = por %p3641_p5, %p36_p6 }
  0x44   : > { %s186_s26 = sand.u32 1, %s3271_s17   ;;  %s2482_s28 = sshll.u32 %s3275_s18, 11 }
  0x45   : > { %s3642_s20 = scalar_select %p3437_p7, 1, 0 }
  0x46   : > { %s2377_s24 = sshll.u32 %s186_s26, 7  ;;  %s3447_s30 = scalar_lea.hbm %s3629_s0, %s2482_s28 }
  0x47   : > { %s190_s5 = scalar_lea.vmem [#allocation2], %s2377_s24  ;;  %p3451_p11 = pnand %p2993_p9, %p38_p3 }
  0x48   : > { %s197_s6 = sshll.u32 %s190_s5, 4  ;;  %s3455_s7 = scalar_lea.sflag [#allocation3], %s186_s26  ;;  %s3449_s6 = int_to_ptr.vmem [resolvable:$true] %s197_s6 }
  0x49   : > { %s3175_s8 = scalar_lea.hbm %s3447_s30, 2048  ;;  %p3177_p0 = pneg %p3451_p11 }
  0x4a   : > { %p3176_p12 = scmp.ne.s32.totalorder %s3447_s30, %s3175_s8  ;;  %s3180_s12 = scalar_lea.hbm %s3629_s0, 4096 }
  0x4b   : > { %p3181_p13 = scmp.lt.u32.totalorder %s3447_s30, %s3629_s0  ;;  %p3182_p6 = scmp.lt.u32.totalorder %s3180_s12, %s3175_s8 }
  0x4c   : > { %p3178_p2 = pnand %p3177_p0, %p3176_p12  ;;  %p3184_p3 = scmp.lt.u32.totalorder %s3175_s8, %s3447_s30 }
  0x4d   : > { %p3183_p10 = por %p3182_p6, %p3181_p13 }
  0x4e   : > { %p3179_p1 = pneg %p3178_p2 }
  0x4f   : > { %p3185_p5 = por %p3184_p3, %p3183_p10 }
  0x51   : > { %p3186_p9 = pnand %p3185_p5, %p3179_p1 }
  0x53   : > { %3189 = shalt.err (!%p3186_p9)
}
  0x54   : > { %s3190_s26 = scalar_lea.vmem %s3449_s6, 2048  ;;  %s3283_s28 = smov [#allocation2]  }
  0x55   : > { %p3191_p12 = scmp.ne.s32.totalorder %s3449_s6, %s3190_s26  ;;  %s3195_s27 = sshll.u32 %s3283_s28, 4  ;;  %s3196_s27 = int_to_ptr.vmem [resolvable:$false] %s3195_s27 }
  0x56   : > { %s3197_s29 = scalar_lea.vmem %s3196_s27, 4096  ;;  %p3198_p4 = scmp.lt.s32.totalorder %s3449_s6, %s3196_s27 }
  0x57   : > { %p3193_p2 = pnand %p3191_p12, %p3177_p0  ;;  %p3199_p13 = scmp.lt.s32.totalorder %s3197_s29, %s3190_s26 }
  0x59   : > { %p3194_p7 = pneg %p3193_p2  ;;  %p3200_p6 = por %p3199_p13, %p3198_p4 }
  0x5b   : > { %p3201_p10 = pnand %p3200_p6, %p3194_p7 }
  0x5d   : > { %3204 = shalt.err (!%p3201_p10)
}
  0x5e   : > { %s3284_s5 = smov 128   ;;  %s3285_s8 = smov 8  }
  0x5f   : > { %2986 = dma.hbm_to_vmem [thread:$0]  (!%p3451_p11), %s3447_s30, 2048, %s3449_s6, %s3455_s7, %s3284_s5, %s3284_s5, %s3285_s8  }
  0x60   : > { %209 = sbr.rel (%p3354_p8) target bundleno = 2394 (0x95a), region = 32  ;;  %s3486_s9 = sand.u32 (!%p3354_p8), 1, %s3267_s16  }
  0x61   : > { %s2381_s10 = sshll.u32 (!%p3354_p8), %s3486_s9, 7  ;;  %s212_s12 = scalar_lea.sflag (!%p3354_p8), [#allocation3], %s3486_s9 }
  0x62   : > { %s3492_s13 = scalar_lea.vmem (!%p3354_p8), [#allocation2], %s2381_s10  ;;  %p3644_p4 = scmp.ne.s32.totalorder (!%p3354_p8), %s3637_s21, 0 }
  0x67   : > { %3250 = dma.done.wait (%p3644_p4), %s212_s12, 2048  }
  0x68   : > { %3252 = vsyncadd (%p3644_p4), %s212_s12, 4294965248  ;;  %p3645_p7 = scmp.eq.s32.totalorder %s3335_s19, 0 }
  0x6a   : > { %3254 = dma.done.wait (%p3645_p7), [#allocation6], 10400   ;;  %p3646_p8 = pmov %p3645_p7 }
  0x6b   : > { %v3039_v0 = vld [vmem:[#allocation5] sm:$0xff]   ;;  %v3040_v1 = vld [vmem:[#allocation5 + $0x8] sm:$0xff]   ;;  %v3041_v2 = vld [vmem:[#allocation5 + $0x10] sm:$0xff]   ;;  %s2385_s21 = sshll.u32 %s3335_s19, 4  ;;  %s3560_s7 = scalar_lea.vmem [#allocation8], %s2381_s10 }
  0x6c   : > { %3256 = vsyncadd (%p3646_p8), [#allocation6], 4294956896  ;;  %2644 = vmatprep.subr.bf16.mxu0 %v3039_v0  ;;  %v3042_v3 = vld [vmem:[#allocation5 + $0x18] sm:$0xff]   ;;  %v262_v4 = vld [vmem:[%s3492_s13] sm:$0xff]  ;;  %p255_p11 = scmp.lt.s32.totalorder %s2385_s21, 31  ;;  %s2483_s24 = sshll.u32 %s3335_s19, 11 }
  0x6d   : > { %2645 = vmatpush3.bf16.msra.mxu0 %v3039_v0  ;;  %v263_v5 = vld [vmem:[%s3492_s13 + $0x8] sm:$0xff]  ;;  %v3043_v7 = vld [vmem:[#allocation5 + $0x20] sm:$0xff]   ;;  %v3049_v11 = vld [vmem:[#allocation5 + $0x50] sm:$0xff]   ;;  %s2255_s26 = sshll.u32 %s3560_s7, 4  ;;  %s3580_s29 = scalar_lea.hbm %s3633_s4, %s2483_s24  ;;  %s3582_s26 = int_to_ptr.vmem [resolvable:$true] %s2255_s26 }
  0x6e   : > { %2646 = vmatprep.subr.bf16.mxu0 %v3040_v1  ;;  %v295_v6 = vpack.c.bf16 %v263_v5, %v262_v4  ;;  %v3047_v8 = vld [vmem:[#allocation5 + $0x40] sm:$0xff]   ;;  %v3048_v9 = vld [vmem:[#allocation5 + $0x48] sm:$0xff]   ;;  %v3045_v12 = vld [vmem:[#allocation5 + $0x30] sm:$0xff]   ;;  %s3655_s21 = smov (!%p255_p11, %s2385_s21), 31  ;;  %s2238_s19 = scalar_lea.sflag [#allocation4], %s3486_s9 }
  0x6f   : > { %v3044_v10 = vld [vmem:[#allocation5 + $0x28] sm:$0xff]   ;;  %2676 = vmatprep.subr.bf16.mxu1 %v3047_v8  ;;  %v3050_v13 = vld [vmem:[#allocation5 + $0x58] sm:$0xff]   ;;  %v3051_v15 = vld [vmem:[#allocation5 + $0x60] sm:$0xff]   ;;  %s2386_s23 = sshll.u32 %s3655_s21, 3  ;;  %s3205_s5 = scalar_lea.vmem %s3582_s26, 2048 }
  0x70   : > { %2660 = vmatprep.mubr.bf16.mxu0 %v295_v6  ;;  %2677 = vmatpush3.bf16.msra.mxu1 %v3047_v8  ;;  %v3046_v14 = vld [vmem:[#allocation5 + $0x38] sm:$0xff]   ;;  %v264_v16 = vld [vmem:[%s3492_s13 + $0x10] sm:$0xff]  ;;  %v266_v18 = vld [vmem:[%s3492_s13 + $0x20] sm:$0xff]  ;;  %s3525_s25 = scalar_lea.vmem %s3632_s3, %s2386_s23  ;;  %p3206_p0 = scmp.ne.s32.totalorder %s3582_s26, %s3205_s5 }
  0x71   : > { %2647 = vmatpush3.bf16.msra.mxu0 %v3040_v1  ;;  %2678 = vmatprep.subr.bf16.mxu1 %v3048_v9  ;;  %v265_v17 = vld [vmem:[%s3492_s13 + $0x18] sm:$0xff]  ;;  %v267_v19 = vld [vmem:[%s3492_s13 + $0x28] sm:$0xff]  ;;  %v268_v23 = vld [vmem:[%s3492_s13 + $0x30] sm:$0xff]  ;;  %p3647_p1 = scmp.ne.s32.totalorder %s3642_s20, 0  ;;  %s3286_s8 = smov [#allocation8]  }
  0x72   : > { %2648 = vmatprep.subr.bf16.mxu0 %v3041_v2  ;;  %v3052_v20 = vld [vmem:[#allocation5 + $0x68] sm:$0xff]   ;;  %v296_v21 = vpack.c.bf16 %v265_v17, %v264_v16  ;;  %v297_v22 = vpack.c.bf16 %v267_v19, %v266_v18  ;;  %v269_v24 = vld [vmem:[%s3492_s13 + $0x38] sm:$0xff]  ;;  %v270_v25 = vld [vmem:[%s3492_s13 + $0x40] sm:$0xff]  ;;  %s3209_s10 = sshll.u32 %s3286_s8, 4  ;;  %s3210_s10 = int_to_ptr.vmem [resolvable:$false] %s3209_s10 }
  0x73   : > { %v271_v26 = vld [vmem:[%s3492_s13 + $0x48] sm:$0xff]  ;;  %v298_v27 = vpack.c.bf16 %v269_v24, %v268_v23  ;;  %v272_v29 = vld [vmem:[%s3492_s13 + $0x50] sm:$0xff]  ;;  %v273_v30 = vld [vmem:[%s3492_s13 + $0x58] sm:$0xff]  ;;  %p3207_p3 = pnand %p3206_p0, %p3647_p1  ;;  %s3211_s12 = scalar_lea.vmem %s3210_s10, 4096 }
  0x74   : > { %2679 = vmatpush3.bf16.msra.mxu1 %v3048_v9  ;;  %v299_v28 = vpack.c.bf16 %v271_v26, %v270_v25  ;;  %v274_v31 = vld [vmem:[%s3492_s13 + $0x60] sm:$0xff]  ;;  %v275_v32 = vld [vmem:[%s3492_s13 + $0x68] sm:$0xff]  ;;  %v300_v33 = vpack.c.bf16 %v273_v30, %v272_v29  ;;  %v276_v35 = vld [vmem:[%s3492_s13 + $0x70] sm:$0xff]  ;;  %p3212_p9 = scmp.lt.s32.totalorder %s3582_s26, %s3210_s10  ;;  %p3213_p12 = scmp.lt.s32.totalorder %s3211_s12, %s3205_s5 }
  0x75   : > { %2649 = vmatpush3.bf16.msra.mxu0 %v3041_v2  ;;  %2680 = vmatprep.subr.bf16.mxu1 %v3049_v11  ;;  %v301_v34 = vpack.c.bf16 %v275_v32, %v274_v31  ;;  %v277_v36 = vld [vmem:[%s3492_s13 + $0x78] sm:$0xff]  ;;  %v3053_v38 = vld [vmem:[#allocation5 + $0x70] sm:$0xff]   ;;  %v3055_v40 = vld [vmem:[#allocation5 + $0x80] sm:$0xff]   ;;  %p3208_p5 = pneg %p3207_p3 }
  0x76   : > { %2650 = vmatprep.subr.bf16.mxu0 %v3042_v3  ;;  %v302_v37 = vpack.c.bf16 %v277_v36, %v276_v35  ;;  %v3054_v39 = vld [vmem:[#allocation5 + $0x78] sm:$0xff]   ;;  %v3056_v41 = vld [vmem:[#allocation5 + $0x88] sm:$0xff]   ;;  %v3057_v42 = vld [vmem:[#allocation5 + $0x90] sm:$0xff]   ;;  %p3214_p2 = por %p3213_p12, %p3212_p9 }
  0x77   : > { %v3058_v43 = vld [vmem:[#allocation5 + $0x98] sm:$0xff]   ;;  %v3059_v44 = vld [vmem:[#allocation5 + $0xa0] sm:$0xff]   ;;  %v3060_v45 = vld [vmem:[#allocation5 + $0xa8] sm:$0xff]  }
  0x78   : > { %2681 = vmatpush3.bf16.msra.mxu1 %v3049_v11  ;;  %v2387_v46 = vld [vmem:[#allocation7] ss:$0 sm:$0xff]  ;;  %p3215_p13 = pnand %p3214_p2, %p3208_p5 }
  0x79   : > { %2651 = vmatpush3.bf16.msra.mxu0 %v3042_v3  ;;  %2682 = vmatprep.subr.bf16.mxu1 %v3050_v13 }
  0x7a   : > { %2652 = vmatprep.subr.bf16.mxu0 %v3043_v7 }
  0x7c   : > { %2683 = vmatpush3.bf16.msra.mxu1 %v3050_v13 }
  0x7d   : > { %2653 = vmatpush3.bf16.msra.mxu0 %v3043_v7  ;;  %2684 = vmatprep.subr.bf16.mxu1 %v3051_v15 }
  0x7e   : > { %2654 = vmatprep.subr.bf16.mxu0 %v3044_v10 }
  0x80   : > { %2685 = vmatpush3.bf16.msra.mxu1 %v3051_v15 }
  0x81   : > { %2655 = vmatpush3.bf16.msra.mxu0 %v3044_v10  ;;  %2686 = vmatprep.subr.bf16.mxu1 %v3052_v20 }
  0x82   : > { %2656 = vmatprep.subr.bf16.mxu0 %v3045_v12 }
  0x84   : > { %2687 = vmatpush3.bf16.msra.mxu1 %v3052_v20 }
  0x85   : > { %2657 = vmatpush3.bf16.msra.mxu0 %v3045_v12  ;;  %2688 = vmatprep.subr.bf16.mxu1 %v3053_v38 }
  0x86   : > { %2658 = vmatprep.subr.bf16.mxu0 %v3046_v14 }
  0x88   : > { %2689 = vmatpush3.bf16.msra.mxu1 %v3053_v38 }
  0x89   : > { %2659 = vmatpush3.bf16.msra.mxu0 %v3046_v14  ;;  %2690 = vmatprep.subr.bf16.mxu1 %v3054_v39 }
  0x8a   : > { %2708 = vmatprep.subr.bf16.mxu0 %v3055_v40 }
  0x8c   : > { %2661 = vmatmul.mubr.bf16.vlgmr.msra.gmra.mrb[0].mxu0 %v296_v21  ;;  %2691 = vmatpush3.bf16.msra.mxu1 %v3054_v39  ;;  %v3061_v39 = vld [vmem:[#allocation5 + $0xb0] sm:$0xff]  }
  0x8d   : > { %2664 = vmatprep.mubr.bf16.mxu0 %v297_v22  ;;  %2709 = vmatpush3.bf16.msra.mxu0 %v3055_v40  ;;  %v3062_v40 = vld [vmem:[#allocation5 + $0xb8] sm:$0xff]  }
  0x8e   : > { %2710 = vmatprep.subr.bf16.mxu0 %v3056_v41 }
  0x91   : > { %2711 = vmatpush3.bf16.msra.mxu0 %v3056_v41  ;;  %v3063_v41 = vld [vmem:[#allocation5 + $0xc0] sm:$0xff]  }
  0x92   : > { %2712 = vmatprep.subr.bf16.mxu0 %v3057_v42  ;;  %2740 = vmatprep.subr.bf16.mxu1 %v3063_v41 }
  0x94   : > { %2665 = vmatmul.mubr.bf16.gmra.mrb[4].mxu0 %v298_v27 }
  0x95   : > { %2668 = vmatprep.mubr.bf16.mxu0 %v299_v28  ;;  %2713 = vmatpush3.bf16.msra.mxu0 %v3057_v42  ;;  %v3064_v42 = vld [vmem:[#allocation5 + $0xc8] sm:$0xff]  }
  0x96   : > { %2714 = vmatprep.subr.bf16.mxu0 %v3058_v43 }
  0x99   : > { %2715 = vmatpush3.bf16.msra.mxu0 %v3058_v43  ;;  %v3065_v43 = vld [vmem:[#allocation5 + $0xd0] sm:$0xff]  }
  0x9a   : > { %2716 = vmatprep.subr.bf16.mxu0 %v3059_v44 }
  0x9c   : > { %2669 = vmatmul.mubr.bf16.gmra.mrb[8].mxu0 %v300_v33 }
  0x9d   : > { %2672 = vmatprep.mubr.bf16.mxu0 %v301_v34  ;;  %2717 = vmatpush3.bf16.msra.mxu0 %v3059_v44  ;;  %v3066_v44 = vld [vmem:[#allocation5 + $0xd8] sm:$0xff]  }
  0x9e   : > { %2718 = vmatprep.subr.bf16.mxu0 %v3060_v45 }
  0xa1   : > { %2719 = vmatpush3.bf16.msra.mxu0 %v3060_v45  ;;  %v3067_v45 = vld [vmem:[#allocation5 + $0xe0] sm:$0xff]  }
  0xa2   : > { %2720 = vmatprep.subr.bf16.mxu0 %v3061_v39 }
  0xa4   : > { %2673 = vmatmul.mubr.bf16.gmra.mrb[12].mxu0 %v302_v37 }
  0xa5   : > { %2721 = vmatpush3.bf16.msra.mxu0 %v3061_v39 }
  0xa6   : > { %2722 = vmatprep.subr.bf16.mxu0 %v3062_v40 }
  0xa9   : > { %2723 = vmatpush3.bf16.msra.mxu0 %v3062_v40  ;;  %v3069_v40 = vld [vmem:[#allocation5 + $0xf0] sm:$0xff]  }
 0x15f   : > { %v2662_v47 = vpop.f32.mrb[0].mxu0 }
 0x160   : > { %v400_v48 = vadd.f32 %v2662_v47, %v2387_v46  ;;  %v391_v49 = vpop.f32.mrb[1].mxu0  ;;  %v2396_v47 = vld [vmem:[#allocation7 + $0x1] ss:$0 sm:$0xff] }
 0x161   : > { %v392_v50 = vadd.f32 %v2387_v46, %v391_v49  ;;  %v2663_v51 = vpop.f32.mrb[2].mxu0 }
 0x162   : > { %v403_v52 = vadd.f32 %v2663_v51, %v2387_v46  ;;  %v394_v53 = vpop.f32.mrb[3].mxu0  ;;  %v456_v55 = vmax.f32 %v400_v48, 0.0 }
 0x163   : > { %v395_v54 = vadd.f32 %v2387_v46, %v394_v53  ;;  %v454_v57 = vmax.f32 %v392_v50, 0.0 }
 0x164   : > { %v457_v56 = vmax.f32 %v403_v52, 0.0 }
 0x165   : > { %v455_v58 = vmax.f32 %v395_v54, 0.0 }
 0x166   : > { %v490_v59 = vpack.c.bf16 %v457_v56, %v456_v55 }
 0x167   : > { %v2666_v60 = vpop.f32.mrb[4].mxu0  ;;  %v489_v61 = vpack.c.bf16 %v455_v58, %v454_v57 }
 0x168   : > { %v416_v62 = vadd.f32 %v2666_v60, %v2387_v46  ;;  %v407_v63 = vpop.f32.mrb[5].mxu0 }
 0x169   : > { %v408_v0 = vadd.f32 %v2387_v46, %v407_v63  ;;  %v2667_v1 = vpop.f32.mrb[6].mxu0  ;;  %2692 = vmatprep.mubr.bf16.mxu1 %v489_v61 }
 0x16a   : > { %v419_v2 = vadd.f32 %v2667_v1, %v2387_v46  ;;  %v410_v3 = vpop.f32.mrb[7].mxu0  ;;  %2693 = vmatmul.mubr.bf16.vlgmr.msra.gmra.mrb[0].mxu1 %v490_v59  ;;  %v460_v5 = vmax.f32 %v416_v62, 0.0 }
 0x16b   : > { %v411_v4 = vadd.f32 %v2387_v46, %v410_v3  ;;  %v458_v7 = vmax.f32 %v408_v0, 0.0  ;;  %2741 = vmatpush3.bf16.msra.mxu1 %v3063_v41  ;;  %v3070_v41 = vld [vmem:[#allocation5 + $0xf8] sm:$0xff]  }
 0x16c   : > { %v461_v6 = vmax.f32 %v419_v2, 0.0  ;;  %2742 = vmatprep.subr.bf16.mxu1 %v3064_v42 }
 0x16d   : > { %v459_v8 = vmax.f32 %v411_v4, 0.0 }
 0x16e   : > { %v492_v9 = vpack.c.bf16 %v461_v6, %v460_v5 }
 0x16f   : > { %v491_v10 = vpack.c.bf16 %v459_v8, %v458_v7  ;;  %v2670_v11 = vpop.f32.mrb[8].mxu0  ;;  %2743 = vmatpush3.bf16.msra.mxu1 %v3064_v42  ;;  %v3071_v42 = vld [vmem:[#allocation5 + $0x100] sm:$0xff]  }
 0x170   : > { %v432_v12 = vadd.f32 %v2670_v11, %v2387_v46  ;;  %v423_v13 = vpop.f32.mrb[9].mxu0  ;;  %2744 = vmatprep.subr.bf16.mxu1 %v3065_v43  ;;  %2772 = vmatprep.subr.bf16.mxu0 %v3071_v42 }
 0x171   : > { %v424_v14 = vadd.f32 %v2387_v46, %v423_v13  ;;  %v2671_v15 = vpop.f32.mrb[10].mxu0  ;;  %2696 = vmatprep.mubr.bf16.mxu1 %v491_v10 }
 0x172   : > { %v435_v16 = vadd.f32 %v2671_v15, %v2387_v46  ;;  %v426_v17 = vpop.f32.mrb[11].mxu0  ;;  %2697 = vmatmul.mubr.bf16.gmra.mrb[4].mxu1 %v492_v9  ;;  %v464_v19 = vmax.f32 %v432_v12, 0.0 }
 0x173   : > { %v427_v18 = vadd.f32 %v2387_v46, %v426_v17  ;;  %v462_v21 = vmax.f32 %v424_v14, 0.0  ;;  %2745 = vmatpush3.bf16.msra.mxu1 %v3065_v43  ;;  %v3072_v43 = vld [vmem:[#allocation5 + $0x108] sm:$0xff]  }
 0x174   : > { %v465_v20 = vmax.f32 %v435_v16, 0.0  ;;  %2746 = vmatprep.subr.bf16.mxu1 %v3066_v44 }
 0x175   : > { %v463_v22 = vmax.f32 %v427_v18, 0.0 }
 0x176   : > { %v494_v23 = vpack.c.bf16 %v465_v20, %v464_v19 }
 0x177   : > { %v493_v24 = vpack.c.bf16 %v463_v22, %v462_v21  ;;  %v2674_v25 = vpop.f32.mrb[12].mxu0  ;;  %2747 = vmatpush3.bf16.msra.mxu1 %v3066_v44  ;;  %v3073_v44 = vld [vmem:[#allocation5 + $0x110] sm:$0xff]  }
 0x178   : > { %v448_v26 = vadd.f32 %v2674_v25, %v2387_v46  ;;  %v439_v27 = vpop.f32.mrb[13].mxu0  ;;  %2748 = vmatprep.subr.bf16.mxu1 %v3067_v45 }
 0x179   : > { %v440_v28 = vadd.f32 %v2387_v46, %v439_v27  ;;  %v2675_v29 = vpop.f32.mrb[14].mxu0  ;;  %2700 = vmatprep.mubr.bf16.mxu1 %v493_v24 }
 0x17a   : > { %v451_v30 = vadd.f32 %v2675_v29, %v2387_v46  ;;  %v442_v31 = vpop.f32.mrb[15].mxu0  ;;  %2701 = vmatmul.mubr.bf16.gmra.mrb[8].mxu1 %v494_v23  ;;  %v468_v33 = vmax.f32 %v448_v26, 0.0 }
 0x17b   : > { %v443_v32 = vadd.f32 %v2387_v46, %v442_v31  ;;  %v466_v35 = vmax.f32 %v440_v28, 0.0  ;;  %v3068_v46 = vld [vmem:[#allocation5 + $0xe8] sm:$0xff]   ;;  %2749 = vmatpush3.bf16.msra.mxu1 %v3067_v45  ;;  %v3074_v45 = vld [vmem:[#allocation5 + $0x118] sm:$0xff]  }
 0x17c   : > { %v469_v34 = vmax.f32 %v451_v30, 0.0  ;;  %2750 = vmatprep.subr.bf16.mxu1 %v3068_v46 }
 0x17d   : > { %v467_v36 = vmax.f32 %v443_v32, 0.0 }
 0x17e   : > { %v496_v37 = vpack.c.bf16 %v469_v34, %v468_v33 }
 0x17f   : > { %v495_v38 = vpack.c.bf16 %v467_v36, %v466_v35  ;;  %2751 = vmatpush3.bf16.msra.mxu1 %v3068_v46  ;;  %v3075_v46 = vld [vmem:[#allocation5 + $0x120] sm:$0xff]  }
 0x180   : > { %2752 = vmatprep.subr.bf16.mxu1 %v3069_v40 }
 0x181   : > { %2704 = vmatprep.mubr.bf16.mxu1 %v495_v38 }
 0x182   : > { %2705 = vmatmul.mubr.bf16.gmra.mrb[12].mxu1 %v496_v37 }
 0x183   : > { %2753 = vmatpush3.bf16.msra.mxu1 %v3069_v40 }
 0x184   : > { %2754 = vmatprep.subr.bf16.mxu1 %v3070_v41 }
 0x187   : > { %2755 = vmatpush3.bf16.msra.mxu1 %v3070_v41  ;;  %v3077_v41 = vld [vmem:[#allocation5 + $0x130] sm:$0xff]  }
 0x23d   : > { %v2694_v48 = vpop.f32.mrb[0].mxu1 }
 0x23e   : > { %v594_v49 = vadd.f32 %v2694_v48, %v2396_v47  ;;  %v585_v50 = vpop.f32.mrb[1].mxu1  ;;  %v2405_v48 = vld [vmem:[#allocation7 + $0x2] ss:$0 sm:$0xff] }
 0x23f   : > { %v586_v51 = vadd.f32 %v2396_v47, %v585_v50  ;;  %v2695_v52 = vpop.f32.mrb[2].mxu1 }
 0x240   : > { %v597_v53 = vadd.f32 %v2695_v52, %v2396_v47  ;;  %v588_v54 = vpop.f32.mrb[3].mxu1  ;;  %v650_v56 = vmax.f32 %v594_v49, 0.0 }
 0x241   : > { %v589_v55 = vadd.f32 %v2396_v47, %v588_v54  ;;  %v648_v58 = vmax.f32 %v586_v51, 0.0 }
 0x242   : > { %v651_v57 = vmax.f32 %v597_v53, 0.0 }
 0x243   : > { %v649_v59 = vmax.f32 %v589_v55, 0.0 }
 0x244   : > { %v684_v60 = vpack.c.bf16 %v651_v57, %v650_v56 }
 0x245   : > { %v683_v61 = vpack.c.bf16 %v649_v59, %v648_v58  ;;  %v2698_v62 = vpop.f32.mrb[4].mxu1 }
 0x246   : > { %v610_v63 = vadd.f32 %v2698_v62, %v2396_v47  ;;  %v601_v0 = vpop.f32.mrb[5].mxu1 }
 0x247   : > { %v602_v1 = vadd.f32 %v2396_v47, %v601_v0  ;;  %v2699_v2 = vpop.f32.mrb[6].mxu1  ;;  %2724 = vmatprep.mubr.bf16.mxu0 %v683_v61 }
 0x248   : > { %v613_v3 = vadd.f32 %v2699_v2, %v2396_v47  ;;  %v604_v4 = vpop.f32.mrb[7].mxu1  ;;  %2725 = vmatmul.mubr.bf16.vlgmr.msra.gmra.mrb[16].mxu0 %v684_v60  ;;  %v654_v6 = vmax.f32 %v610_v63, 0.0 }
 0x249   : > { %v605_v5 = vadd.f32 %v2396_v47, %v604_v4  ;;  %v652_v8 = vmax.f32 %v602_v1, 0.0  ;;  %2773 = vmatpush3.bf16.msra.mxu0 %v3071_v42  ;;  %v3078_v42 = vld [vmem:[#allocation5 + $0x138] sm:$0xff]  }
 0x24a   : > { %v655_v7 = vmax.f32 %v613_v3, 0.0  ;;  %2774 = vmatprep.subr.bf16.mxu0 %v3072_v43 }
 0x24b   : > { %v653_v9 = vmax.f32 %v605_v5, 0.0 }
 0x24c   : > { %v686_v10 = vpack.c.bf16 %v655_v7, %v654_v6 }
 0x24d   : > { %v685_v11 = vpack.c.bf16 %v653_v9, %v652_v8  ;;  %v2702_v12 = vpop.f32.mrb[8].mxu1  ;;  %2775 = vmatpush3.bf16.msra.mxu0 %v3072_v43  ;;  %v3079_v43 = vld [vmem:[#allocation5 + $0x140] sm:$0xff]  }
 0x24e   : > { %v626_v13 = vadd.f32 %v2702_v12, %v2396_v47  ;;  %v617_v14 = vpop.f32.mrb[9].mxu1  ;;  %2776 = vmatprep.subr.bf16.mxu0 %v3073_v44  ;;  %2804 = vmatprep.subr.bf16.mxu1 %v3079_v43 }
 0x24f   : > { %v618_v15 = vadd.f32 %v2396_v47, %v617_v14  ;;  %v2703_v16 = vpop.f32.mrb[10].mxu1  ;;  %2728 = vmatprep.mubr.bf16.mxu0 %v685_v11 }
 0x250   : > { %v629_v17 = vadd.f32 %v2703_v16, %v2396_v47  ;;  %v620_v18 = vpop.f32.mrb[11].mxu1  ;;  %2729 = vmatmul.mubr.bf16.gmra.mrb[20].mxu0 %v686_v10  ;;  %v658_v20 = vmax.f32 %v626_v13, 0.0 }
 0x251   : > { %v621_v19 = vadd.f32 %v2396_v47, %v620_v18  ;;  %v656_v22 = vmax.f32 %v618_v15, 0.0  ;;  %2777 = vmatpush3.bf16.msra.mxu0 %v3073_v44  ;;  %v3080_v44 = vld [vmem:[#allocation5 + $0x148] sm:$0xff]  }
 0x252   : > { %v659_v21 = vmax.f32 %v629_v17, 0.0  ;;  %2778 = vmatprep.subr.bf16.mxu0 %v3074_v45 }
 0x253   : > { %v657_v23 = vmax.f32 %v621_v19, 0.0 }
 0x254   : > { %v688_v24 = vpack.c.bf16 %v659_v21, %v658_v20 }
 0x255   : > { %v687_v25 = vpack.c.bf16 %v657_v23, %v656_v22  ;;  %v2706_v26 = vpop.f32.mrb[12].mxu1  ;;  %2779 = vmatpush3.bf16.msra.mxu0 %v3074_v45  ;;  %v3081_v45 = vld [vmem:[#allocation5 + $0x150] sm:$0xff]  }
 0x256   : > { %v642_v27 = vadd.f32 %v2706_v26, %v2396_v47  ;;  %v633_v28 = vpop.f32.mrb[13].mxu1  ;;  %2780 = vmatprep.subr.bf16.mxu0 %v3075_v46 }
 0x257   : > { %v634_v29 = vadd.f32 %v2396_v47, %v633_v28  ;;  %v2707_v30 = vpop.f32.mrb[14].mxu1  ;;  %2732 = vmatprep.mubr.bf16.mxu0 %v687_v25 }
 0x258   : > { %v645_v31 = vadd.f32 %v2707_v30, %v2396_v47  ;;  %v636_v32 = vpop.f32.mrb[15].mxu1  ;;  %2733 = vmatmul.mubr.bf16.gmra.mrb[24].mxu0 %v688_v24  ;;  %v662_v34 = vmax.f32 %v642_v27, 0.0 }
 0x259   : > { %v637_v33 = vadd.f32 %v2396_v47, %v636_v32  ;;  %v660_v36 = vmax.f32 %v634_v29, 0.0  ;;  %v3076_v47 = vld [vmem:[#allocation5 + $0x128] sm:$0xff]   ;;  %2781 = vmatpush3.bf16.msra.mxu0 %v3075_v46  ;;  %v3082_v46 = vld [vmem:[#allocation5 + $0x158] sm:$0xff]  }
 0x25a   : > { %v663_v35 = vmax.f32 %v645_v31, 0.0  ;;  %2782 = vmatprep.subr.bf16.mxu0 %v3076_v47 }
 0x25b   : > { %v661_v37 = vmax.f32 %v637_v33, 0.0 }
 0x25c   : > { %v690_v38 = vpack.c.bf16 %v663_v35, %v662_v34 }
 0x25d   : > { %v689_v39 = vpack.c.bf16 %v661_v37, %v660_v36  ;;  %2783 = vmatpush3.bf16.msra.mxu0 %v3076_v47  ;;  %v3083_v47 = vld [vmem:[#allocation5 + $0x160] sm:$0xff]  }
 0x25e   : > { %2784 = vmatprep.subr.bf16.mxu0 %v3077_v41 }
 0x25f   : > { %2736 = vmatprep.mubr.bf16.mxu0 %v689_v39 }
 0x260   : > { %2737 = vmatmul.mubr.bf16.gmra.mrb[28].mxu0 %v690_v38 }
 0x261   : > { %2785 = vmatpush3.bf16.msra.mxu0 %v3077_v41 }
 0x262   : > { %2786 = vmatprep.subr.bf16.mxu0 %v3078_v42 }
 0x265   : > { %2787 = vmatpush3.bf16.msra.mxu0 %v3078_v42  ;;  %v3085_v42 = vld [vmem:[#allocation5 + $0x170] sm:$0xff]  }
 0x31b   : > { %v2726_v49 = vpop.f32.mrb[16].mxu0 }
 0x31c   : > { %v788_v50 = vadd.f32 %v2726_v49, %v2405_v48  ;;  %v779_v51 = vpop.f32.mrb[17].mxu0  ;;  %v2414_v49 = vld [vmem:[#allocation7 + $0x3] ss:$0 sm:$0xff] }
 0x31d   : > { %v780_v52 = vadd.f32 %v2405_v48, %v779_v51  ;;  %v2727_v53 = vpop.f32.mrb[18].mxu0 }
 0x31e   : > { %v791_v54 = vadd.f32 %v2727_v53, %v2405_v48  ;;  %v782_v55 = vpop.f32.mrb[19].mxu0  ;;  %v844_v57 = vmax.f32 %v788_v50, 0.0 }
 0x31f   : > { %v783_v56 = vadd.f32 %v2405_v48, %v782_v55  ;;  %v842_v59 = vmax.f32 %v780_v52, 0.0 }
 0x320   : > { %v845_v58 = vmax.f32 %v791_v54, 0.0 }
 0x321   : > { %v843_v60 = vmax.f32 %v783_v56, 0.0 }
 0x322   : > { %v878_v61 = vpack.c.bf16 %v845_v58, %v844_v57 }
 0x323   : > { %v877_v62 = vpack.c.bf16 %v843_v60, %v842_v59  ;;  %v2730_v63 = vpop.f32.mrb[20].mxu0 }
 0x324   : > { %v804_v0 = vadd.f32 %v2730_v63, %v2405_v48  ;;  %v795_v1 = vpop.f32.mrb[21].mxu0 }
 0x325   : > { %v796_v2 = vadd.f32 %v2405_v48, %v795_v1  ;;  %v2731_v3 = vpop.f32.mrb[22].mxu0  ;;  %2756 = vmatprep.mubr.bf16.mxu1 %v877_v62 }
 0x326   : > { %v807_v4 = vadd.f32 %v2731_v3, %v2405_v48  ;;  %v798_v5 = vpop.f32.mrb[23].mxu0  ;;  %2757 = vmatmul.mubr.bf16.vlgmr.msra.gmra.mrb[16].mxu1 %v878_v61  ;;  %v848_v7 = vmax.f32 %v804_v0, 0.0 }
 0x327   : > { %v799_v6 = vadd.f32 %v2405_v48, %v798_v5  ;;  %v846_v9 = vmax.f32 %v796_v2, 0.0  ;;  %2805 = vmatpush3.bf16.msra.mxu1 %v3079_v43  ;;  %v3086_v43 = vld [vmem:[#allocation5 + $0x178] sm:$0xff]  }
 0x328   : > { %v849_v8 = vmax.f32 %v807_v4, 0.0  ;;  %2806 = vmatprep.subr.bf16.mxu1 %v3080_v44 }
 0x329   : > { %v847_v10 = vmax.f32 %v799_v6, 0.0 }
 0x32a   : > { %v880_v11 = vpack.c.bf16 %v849_v8, %v848_v7 }
 0x32b   : > { %v879_v12 = vpack.c.bf16 %v847_v10, %v846_v9  ;;  %v2734_v13 = vpop.f32.mrb[24].mxu0  ;;  %2807 = vmatpush3.bf16.msra.mxu1 %v3080_v44  ;;  %v3087_v44 = vld [vmem:[#allocation5 + $0x180] sm:$0xff]  }
 0x32c   : > { %v820_v14 = vadd.f32 %v2734_v13, %v2405_v48  ;;  %v811_v15 = vpop.f32.mrb[25].mxu0  ;;  %2808 = vmatprep.subr.bf16.mxu1 %v3081_v45  ;;  %2836 = vmatprep.subr.bf16.mxu0 %v3087_v44 }
 0x32d   : > { %v812_v16 = vadd.f32 %v2405_v48, %v811_v15  ;;  %v2735_v17 = vpop.f32.mrb[26].mxu0  ;;  %2760 = vmatprep.mubr.bf16.mxu1 %v879_v12 }
 0x32e   : > { %v823_v18 = vadd.f32 %v2735_v17, %v2405_v48  ;;  %v814_v19 = vpop.f32.mrb[27].mxu0  ;;  %2761 = vmatmul.mubr.bf16.gmra.mrb[20].mxu1 %v880_v11  ;;  %v852_v21 = vmax.f32 %v820_v14, 0.0 }
 0x32f   : > { %v815_v20 = vadd.f32 %v2405_v48, %v814_v19  ;;  %v850_v23 = vmax.f32 %v812_v16, 0.0  ;;  %2809 = vmatpush3.bf16.msra.mxu1 %v3081_v45  ;;  %v3088_v45 = vld [vmem:[#allocation5 + $0x188] sm:$0xff]  }
 0x330   : > { %v853_v22 = vmax.f32 %v823_v18, 0.0  ;;  %2810 = vmatprep.subr.bf16.mxu1 %v3082_v46 }
 0x331   : > { %v851_v24 = vmax.f32 %v815_v20, 0.0 }
 0x332   : > { %v882_v25 = vpack.c.bf16 %v853_v22, %v852_v21 }
 0x333   : > { %v881_v26 = vpack.c.bf16 %v851_v24, %v850_v23  ;;  %v2738_v27 = vpop.f32.mrb[28].mxu0  ;;  %2811 = vmatpush3.bf16.msra.mxu1 %v3082_v46  ;;  %v3089_v46 = vld [vmem:[#allocation5 + $0x190] sm:$0xff]  }
 0x334   : > { %v836_v28 = vadd.f32 %v2738_v27, %v2405_v48  ;;  %v827_v29 = vpop.f32.mrb[29].mxu0  ;;  %2812 = vmatprep.subr.bf16.mxu1 %v3083_v47 }
 0x335   : > { %v828_v30 = vadd.f32 %v2405_v48, %v827_v29  ;;  %v2739_v31 = vpop.f32.mrb[30].mxu0  ;;  %2764 = vmatprep.mubr.bf16.mxu1 %v881_v26 }
 0x336   : > { %v839_v32 = vadd.f32 %v2739_v31, %v2405_v48  ;;  %v830_v33 = vpop.f32.mrb[31].mxu0  ;;  %2765 = vmatmul.mubr.bf16.gmra.mrb[24].mxu1 %v882_v25  ;;  %v856_v35 = vmax.f32 %v836_v28, 0.0 }
 0x337   : > { %v831_v34 = vadd.f32 %v2405_v48, %v830_v33  ;;  %v854_v37 = vmax.f32 %v828_v30, 0.0  ;;  %v3084_v48 = vld [vmem:[#allocation5 + $0x168] sm:$0xff]   ;;  %2813 = vmatpush3.bf16.msra.mxu1 %v3083_v47  ;;  %v3090_v47 = vld [vmem:[#allocation5 + $0x198] sm:$0xff]  }
 0x338   : > { %v857_v36 = vmax.f32 %v839_v32, 0.0  ;;  %2814 = vmatprep.subr.bf16.mxu1 %v3084_v48 }
 0x339   : > { %v855_v38 = vmax.f32 %v831_v34, 0.0 }
 0x33a   : > { %v884_v39 = vpack.c.bf16 %v857_v36, %v856_v35 }
 0x33b   : > { %v883_v40 = vpack.c.bf16 %v855_v38, %v854_v37  ;;  %2815 = vmatpush3.bf16.msra.mxu1 %v3084_v48  ;;  %v3091_v48 = vld [vmem:[#allocation5 + $0x1a0] sm:$0xff]  }
 0x33c   : > { %2816 = vmatprep.subr.bf16.mxu1 %v3085_v42 }
 0x33d   : > { %2768 = vmatprep.mubr.bf16.mxu1 %v883_v40 }
 0x33e   : > { %2769 = vmatmul.mubr.bf16.gmra.mrb[28].mxu1 %v884_v39 }
 0x33f   : > { %2817 = vmatpush3.bf16.msra.mxu1 %v3085_v42 }
 0x340   : > { %2818 = vmatprep.subr.bf16.mxu1 %v3086_v43 }
 0x343   : > { %2819 = vmatpush3.bf16.msra.mxu1 %v3086_v43  ;;  %v3093_v43 = vld [vmem:[#allocation5 + $0x1b0] sm:$0xff]  }
 0x3f9   : > { %v2758_v50 = vpop.f32.mrb[16].mxu1 }
 0x3fa   : > { %v982_v51 = vadd.f32 %v2758_v50, %v2414_v49  ;;  %v973_v52 = vpop.f32.mrb[17].mxu1  ;;  %v3519_v50 = vld [vmem:[#allocation7 + $0x4] ss:$0 sm:$0xff] }
 0x3fb   : > { %v974_v53 = vadd.f32 %v2414_v49, %v973_v52  ;;  %v2759_v54 = vpop.f32.mrb[18].mxu1 }
 0x3fc   : > { %v985_v55 = vadd.f32 %v2759_v54, %v2414_v49  ;;  %v976_v56 = vpop.f32.mrb[19].mxu1  ;;  %v1038_v58 = vmax.f32 %v982_v51, 0.0 }
 0x3fd   : > { %v977_v57 = vadd.f32 %v2414_v49, %v976_v56  ;;  %v1036_v60 = vmax.f32 %v974_v53, 0.0 }
 0x3fe   : > { %v1039_v59 = vmax.f32 %v985_v55, 0.0 }
 0x3ff   : > { %v1037_v61 = vmax.f32 %v977_v57, 0.0 }
 0x400   : > { %v1072_v62 = vpack.c.bf16 %v1039_v59, %v1038_v58 }
 0x401   : > { %v1071_v63 = vpack.c.bf16 %v1037_v61, %v1036_v60  ;;  %v2762_v0 = vpop.f32.mrb[20].mxu1 }
 0x402   : > { %v998_v1 = vadd.f32 %v2762_v0, %v2414_v49  ;;  %v989_v2 = vpop.f32.mrb[21].mxu1 }
 0x403   : > { %v990_v3 = vadd.f32 %v2414_v49, %v989_v2  ;;  %v2763_v4 = vpop.f32.mrb[22].mxu1  ;;  %2788 = vmatprep.mubr.bf16.mxu0 %v1071_v63 }
 0x404   : > { %v1001_v5 = vadd.f32 %v2763_v4, %v2414_v49  ;;  %v992_v6 = vpop.f32.mrb[23].mxu1  ;;  %2789 = vmatmul.mubr.bf16.vlgmr.msra.gmra.mrb[32].mxu0 %v1072_v62  ;;  %v1042_v8 = vmax.f32 %v998_v1, 0.0 }
 0x405   : > { %v993_v7 = vadd.f32 %v2414_v49, %v992_v6  ;;  %v1040_v10 = vmax.f32 %v990_v3, 0.0  ;;  %2837 = vmatpush3.bf16.msra.mxu0 %v3087_v44  ;;  %v3094_v44 = vld [vmem:[#allocation5 + $0x1b8] sm:$0xff]  }
 0x406   : > { %v1043_v9 = vmax.f32 %v1001_v5, 0.0  ;;  %2838 = vmatprep.subr.bf16.mxu0 %v3088_v45 }
 0x407   : > { %v1041_v11 = vmax.f32 %v993_v7, 0.0 }
 0x408   : > { %v1074_v12 = vpack.c.bf16 %v1043_v9, %v1042_v8 }
 0x409   : > { %v1073_v13 = vpack.c.bf16 %v1041_v11, %v1040_v10  ;;  %v2766_v14 = vpop.f32.mrb[24].mxu1  ;;  %2839 = vmatpush3.bf16.msra.mxu0 %v3088_v45  ;;  %v3095_v45 = vld [vmem:[#allocation5 + $0x1c0] sm:$0xff]  }
 0x40a   : > { %v1014_v15 = vadd.f32 %v2766_v14, %v2414_v49  ;;  %v1005_v16 = vpop.f32.mrb[25].mxu1  ;;  %2840 = vmatprep.subr.bf16.mxu0 %v3089_v46  ;;  %2868 = vmatprep.subr.bf16.mxu1 %v3095_v45 }
 0x40b   : > { %v1006_v17 = vadd.f32 %v2414_v49, %v1005_v16  ;;  %v2767_v18 = vpop.f32.mrb[26].mxu1  ;;  %2792 = vmatprep.mubr.bf16.mxu0 %v1073_v13 }
 0x40c   : > { %v1017_v19 = vadd.f32 %v2767_v18, %v2414_v49  ;;  %v1008_v20 = vpop.f32.mrb[27].mxu1  ;;  %2793 = vmatmul.mubr.bf16.gmra.mrb[36].mxu0 %v1074_v12  ;;  %v1046_v22 = vmax.f32 %v1014_v15, 0.0 }
 0x40d   : > { %v1009_v21 = vadd.f32 %v2414_v49, %v1008_v20  ;;  %v1044_v24 = vmax.f32 %v1006_v17, 0.0  ;;  %2841 = vmatpush3.bf16.msra.mxu0 %v3089_v46  ;;  %v3096_v46 = vld [vmem:[#allocation5 + $0x1c8] sm:$0xff]  }
 0x40e   : > { %v1047_v23 = vmax.f32 %v1017_v19, 0.0  ;;  %2842 = vmatprep.subr.bf16.mxu0 %v3090_v47 }
 0x40f   : > { %v1045_v25 = vmax.f32 %v1009_v21, 0.0 }
 0x410   : > { %v1076_v26 = vpack.c.bf16 %v1047_v23, %v1046_v22 }
 0x411   : > { %v1075_v27 = vpack.c.bf16 %v1045_v25, %v1044_v24  ;;  %v2770_v28 = vpop.f32.mrb[28].mxu1  ;;  %2843 = vmatpush3.bf16.msra.mxu0 %v3090_v47  ;;  %v3097_v47 = vld [vmem:[#allocation5 + $0x1d0] sm:$0xff]  }
 0x412   : > { %v1030_v29 = vadd.f32 %v2770_v28, %v2414_v49  ;;  %v1021_v30 = vpop.f32.mrb[29].mxu1  ;;  %2844 = vmatprep.subr.bf16.mxu0 %v3091_v48 }
 0x413   : > { %v1022_v31 = vadd.f32 %v2414_v49, %v1021_v30  ;;  %v2771_v32 = vpop.f32.mrb[30].mxu1  ;;  %2796 = vmatprep.mubr.bf16.mxu0 %v1075_v27 }
 0x414   : > { %v1033_v33 = vadd.f32 %v2771_v32, %v2414_v49  ;;  %v1024_v34 = vpop.f32.mrb[31].mxu1  ;;  %2797 = vmatmul.mubr.bf16.gmra.mrb[40].mxu0 %v1076_v26  ;;  %v1050_v36 = vmax.f32 %v1030_v29, 0.0 }
 0x415   : > { %v1025_v35 = vadd.f32 %v2414_v49, %v1024_v34  ;;  %v1048_v38 = vmax.f32 %v1022_v31, 0.0  ;;  %v3092_v49 = vld [vmem:[#allocation5 + $0x1a8] sm:$0xff]   ;;  %2845 = vmatpush3.bf16.msra.mxu0 %v3091_v48  ;;  %v3098_v48 = vld [vmem:[#allocation5 + $0x1d8] sm:$0xff]  }
 0x416   : > { %v1051_v37 = vmax.f32 %v1033_v33, 0.0  ;;  %2846 = vmatprep.subr.bf16.mxu0 %v3092_v49 }
 0x417   : > { %v1049_v39 = vmax.f32 %v1025_v35, 0.0 }
 0x418   : > { %v1078_v40 = vpack.c.bf16 %v1051_v37, %v1050_v36 }
 0x419   : > { %v1077_v41 = vpack.c.bf16 %v1049_v39, %v1048_v38  ;;  %2847 = vmatpush3.bf16.msra.mxu0 %v3092_v49  ;;  %v3099_v49 = vld [vmem:[#allocation5 + $0x1e0] sm:$0xff]  }
 0x41a   : > { %2848 = vmatprep.subr.bf16.mxu0 %v3093_v43 }
 0x41b   : > { %2800 = vmatprep.mubr.bf16.mxu0 %v1077_v41 }
 0x41c   : > { %2801 = vmatmul.mubr.bf16.gmra.mrb[44].mxu0 %v1078_v40 }
 0x41d   : > { %2849 = vmatpush3.bf16.msra.mxu0 %v3093_v43 }
 0x41e   : > { %2850 = vmatprep.subr.bf16.mxu0 %v3094_v44 }
 0x421   : > { %2851 = vmatpush3.bf16.msra.mxu0 %v3094_v44  ;;  %v3101_v44 = vld [vmem:[#allocation5 + $0x1f0] sm:$0xff]  }
 0x4d7   : > { %v2790_v51 = vpop.f32.mrb[32].mxu0 }
 0x4d8   : > { %v1176_v52 = vadd.f32 %v2790_v51, %v3519_v50  ;;  %v1167_v53 = vpop.f32.mrb[33].mxu0  ;;  %v2432_v51 = vld [vmem:[#allocation7 + $0x5] ss:$0 sm:$0xff] }
 0x4d9   : > { %v1168_v54 = vadd.f32 %v3519_v50, %v1167_v53  ;;  %v2791_v55 = vpop.f32.mrb[34].mxu0 }
 0x4da   : > { %v1232_v56 = vmax.f32 %v1176_v52, 0.0  ;;  %v1179_v57 = vadd.f32 %v2791_v55, %v3519_v50  ;;  %v1170_v58 = vpop.f32.mrb[35].mxu0 }
 0x4db   : > { %v1230_v59 = vmax.f32 %v1168_v54, 0.0  ;;  %v1171_v60 = vadd.f32 %v3519_v50, %v1170_v58 }
 0x4dc   : > { %1248 = vst [vmem:[%s3525_s25 + $0x10] sm:$0xff] %v1232_v56  ;;  %v1233_v61 = vmax.f32 %v1179_v57, 0.0 }
 0x4dd   : > { %1246 = vst [vmem:[%s3525_s25] sm:$0xff] %v1230_v59  ;;  %v1231_v62 = vmax.f32 %v1171_v60, 0.0 }
 0x4de   : > { %1249 = vst [vmem:[%s3525_s25 + $0x18] sm:$0xff] %v1233_v61  ;;  %v1282_v63 = vpack.c.bf16 %v1233_v61, %v1232_v56 }
 0x4df   : > { %1247 = vst [vmem:[%s3525_s25 + $0x8] sm:$0xff] %v1231_v62  ;;  %v1281_v0 = vpack.c.bf16 %v1231_v62, %v1230_v59  ;;  %v2794_v1 = vpop.f32.mrb[36].mxu0 }
 0x4e0   : > { %v1192_v2 = vadd.f32 %v2794_v1, %v3519_v50  ;;  %v1183_v3 = vpop.f32.mrb[37].mxu0 }
 0x4e1   : > { %v1184_v4 = vadd.f32 %v3519_v50, %v1183_v3  ;;  %v2795_v5 = vpop.f32.mrb[38].mxu0  ;;  %2820 = vmatprep.mubr.bf16.mxu1 %v1281_v0 }
 0x4e2   : > { %v1236_v6 = vmax.f32 %v1192_v2, 0.0  ;;  %v1195_v7 = vadd.f32 %v2795_v5, %v3519_v50  ;;  %v1186_v8 = vpop.f32.mrb[39].mxu0  ;;  %2821 = vmatmul.mubr.bf16.vlgmr.msra.gmra.mrb[32].mxu1 %v1282_v63 }
 0x4e3   : > { %v1234_v9 = vmax.f32 %v1184_v4, 0.0  ;;  %v1187_v10 = vadd.f32 %v3519_v50, %v1186_v8  ;;  %2869 = vmatpush3.bf16.msra.mxu1 %v3095_v45  ;;  %v3102_v45 = vld [vmem:[#allocation5 + $0x1f8] sm:$0xff]  }
 0x4e4   : > { %1252 = vst [vmem:[%s3525_s25 + $0x30] sm:$0xff] %v1236_v6  ;;  %v1237_v11 = vmax.f32 %v1195_v7, 0.0  ;;  %2870 = vmatprep.subr.bf16.mxu1 %v3096_v46 }
 0x4e5   : > { %1250 = vst [vmem:[%s3525_s25 + $0x20] sm:$0xff] %v1234_v9  ;;  %v1235_v12 = vmax.f32 %v1187_v10, 0.0 }
 0x4e6   : > { %1253 = vst [vmem:[%s3525_s25 + $0x38] sm:$0xff] %v1237_v11  ;;  %v1284_v13 = vpack.c.bf16 %v1237_v11, %v1236_v6 }
 0x4e7   : > { %1251 = vst [vmem:[%s3525_s25 + $0x28] sm:$0xff] %v1235_v12  ;;  %v1283_v14 = vpack.c.bf16 %v1235_v12, %v1234_v9  ;;  %v2798_v15 = vpop.f32.mrb[40].mxu0  ;;  %2871 = vmatpush3.bf16.msra.mxu1 %v3096_v46  ;;  %v3103_v46 = vld [vmem:[#allocation5 + $0x200] sm:$0xff]  }
 0x4e8   : > { %v1208_v16 = vadd.f32 %v2798_v15, %v3519_v50  ;;  %v1199_v17 = vpop.f32.mrb[41].mxu0  ;;  %2872 = vmatprep.subr.bf16.mxu1 %v3097_v47  ;;  %2900 = vmatprep.subr.bf16.mxu0 %v3103_v46 }
 0x4e9   : > { %v1200_v18 = vadd.f32 %v3519_v50, %v1199_v17  ;;  %v2799_v19 = vpop.f32.mrb[42].mxu0  ;;  %2824 = vmatprep.mubr.bf16.mxu1 %v1283_v14 }
 0x4ea   : > { %v1240_v20 = vmax.f32 %v1208_v16, 0.0  ;;  %v1211_v21 = vadd.f32 %v2799_v19, %v3519_v50  ;;  %v1202_v22 = vpop.f32.mrb[43].mxu0  ;;  %2825 = vmatmul.mubr.bf16.gmra.mrb[36].mxu1 %v1284_v13 }
 0x4eb   : > { %v1238_v23 = vmax.f32 %v1200_v18, 0.0  ;;  %v1203_v24 = vadd.f32 %v3519_v50, %v1202_v22  ;;  %2873 = vmatpush3.bf16.msra.mxu1 %v3097_v47  ;;  %v3104_v47 = vld [vmem:[#allocation5 + $0x208] sm:$0xff]  }
 0x4ec   : > { %1256 = vst [vmem:[%s3525_s25 + $0x50] sm:$0xff] %v1240_v20  ;;  %v1241_v25 = vmax.f32 %v1211_v21, 0.0  ;;  %2874 = vmatprep.subr.bf16.mxu1 %v3098_v48 }
 0x4ed   : > { %1254 = vst [vmem:[%s3525_s25 + $0x40] sm:$0xff] %v1238_v23  ;;  %v1239_v26 = vmax.f32 %v1203_v24, 0.0 }
 0x4ee   : > { %1257 = vst [vmem:[%s3525_s25 + $0x58] sm:$0xff] %v1241_v25  ;;  %v1286_v27 = vpack.c.bf16 %v1241_v25, %v1240_v20 }
 0x4ef   : > { %1255 = vst [vmem:[%s3525_s25 + $0x48] sm:$0xff] %v1239_v26  ;;  %v1285_v28 = vpack.c.bf16 %v1239_v26, %v1238_v23  ;;  %v2802_v29 = vpop.f32.mrb[44].mxu0  ;;  %2875 = vmatpush3.bf16.msra.mxu1 %v3098_v48  ;;  %v3105_v48 = vld [vmem:[#allocation5 + $0x210] sm:$0xff]  }
 0x4f0   : > { %v1224_v30 = vadd.f32 %v2802_v29, %v3519_v50  ;;  %v1215_v31 = vpop.f32.mrb[45].mxu0  ;;  %2876 = vmatprep.subr.bf16.mxu1 %v3099_v49 }
 0x4f1   : > { %v1216_v32 = vadd.f32 %v3519_v50, %v1215_v31  ;;  %v2803_v33 = vpop.f32.mrb[46].mxu0  ;;  %2828 = vmatprep.mubr.bf16.mxu1 %v1285_v28 }
 0x4f2   : > { %v1244_v34 = vmax.f32 %v1224_v30, 0.0  ;;  %v1227_v35 = vadd.f32 %v2803_v33, %v3519_v50  ;;  %v1218_v36 = vpop.f32.mrb[47].mxu0  ;;  %2829 = vmatmul.mubr.bf16.gmra.mrb[40].mxu1 %v1286_v27 }
 0x4f3   : > { %v1242_v37 = vmax.f32 %v1216_v32, 0.0  ;;  %v1219_v38 = vadd.f32 %v3519_v50, %v1218_v36  ;;  %v3100_v50 = vld [vmem:[#allocation5 + $0x1e8] sm:$0xff]   ;;  %2877 = vmatpush3.bf16.msra.mxu1 %v3099_v49  ;;  %v3106_v49 = vld [vmem:[#allocation5 + $0x218] sm:$0xff]  }
 0x4f4   : > { %1260 = vst [vmem:[%s3525_s25 + $0x70] sm:$0xff] %v1244_v34  ;;  %v1245_v39 = vmax.f32 %v1227_v35, 0.0  ;;  %2878 = vmatprep.subr.bf16.mxu1 %v3100_v50 }
 0x4f5   : > { %1258 = vst [vmem:[%s3525_s25 + $0x60] sm:$0xff] %v1242_v37  ;;  %v1243_v40 = vmax.f32 %v1219_v38, 0.0 }
 0x4f6   : > { %1261 = vst [vmem:[%s3525_s25 + $0x78] sm:$0xff] %v1245_v39  ;;  %v1288_v41 = vpack.c.bf16 %v1245_v39, %v1244_v34 }
 0x4f7   : > { %1259 = vst [vmem:[%s3525_s25 + $0x68] sm:$0xff] %v1243_v40  ;;  %v1287_v42 = vpack.c.bf16 %v1243_v40, %v1242_v37  ;;  %2879 = vmatpush3.bf16.msra.mxu1 %v3100_v50  ;;  %v3107_v50 = vld [vmem:[#allocation5 + $0x220] sm:$0xff]  }
 0x4f8   : > { %2880 = vmatprep.subr.bf16.mxu1 %v3101_v44 }
 0x4f9   : > { %2832 = vmatprep.mubr.bf16.mxu1 %v1287_v42 }
 0x4fa   : > { %2833 = vmatmul.mubr.bf16.gmra.mrb[44].mxu1 %v1288_v41 }
 0x4fb   : > { %2881 = vmatpush3.bf16.msra.mxu1 %v3101_v44 }
 0x4fc   : > { %2882 = vmatprep.subr.bf16.mxu1 %v3102_v45 }
 0x4ff   : > { %2883 = vmatpush3.bf16.msra.mxu1 %v3102_v45  ;;  %v3109_v45 = vld [vmem:[#allocation5 + $0x230] sm:$0xff]  }
 0x5b5   : > { %v2822_v52 = vpop.f32.mrb[32].mxu1 }
 0x5b6   : > { %v1386_v53 = vadd.f32 %v2822_v52, %v2432_v51  ;;  %v1377_v54 = vpop.f32.mrb[33].mxu1  ;;  %v2441_v52 = vld [vmem:[#allocation7 + $0x6] ss:$0 sm:$0xff] }
 0x5b7   : > { %v1378_v55 = vadd.f32 %v2432_v51, %v1377_v54  ;;  %v2823_v56 = vpop.f32.mrb[34].mxu1 }
 0x5b8   : > { %v1389_v57 = vadd.f32 %v2823_v56, %v2432_v51  ;;  %v1380_v58 = vpop.f32.mrb[35].mxu1  ;;  %v1442_v60 = vmax.f32 %v1386_v53, 0.0 }
 0x5b9   : > { %v1381_v59 = vadd.f32 %v2432_v51, %v1380_v58  ;;  %v1440_v62 = vmax.f32 %v1378_v55, 0.0 }
 0x5ba   : > { %v1443_v61 = vmax.f32 %v1389_v57, 0.0 }
 0x5bb   : > { %v1441_v63 = vmax.f32 %v1381_v59, 0.0 }
 0x5bc   : > { %v1476_v0 = vpack.c.bf16 %v1443_v61, %v1442_v60 }
 0x5bd   : > { %v1475_v1 = vpack.c.bf16 %v1441_v63, %v1440_v62  ;;  %v2826_v2 = vpop.f32.mrb[36].mxu1 }
 0x5be   : > { %v1402_v3 = vadd.f32 %v2826_v2, %v2432_v51  ;;  %v1393_v4 = vpop.f32.mrb[37].mxu1 }
 0x5bf   : > { %v1394_v5 = vadd.f32 %v2432_v51, %v1393_v4  ;;  %v2827_v6 = vpop.f32.mrb[38].mxu1  ;;  %2852 = vmatprep.mubr.bf16.mxu0 %v1475_v1 }
 0x5c0   : > { %v1405_v7 = vadd.f32 %v2827_v6, %v2432_v51  ;;  %v1396_v8 = vpop.f32.mrb[39].mxu1  ;;  %2853 = vmatmul.mubr.bf16.vlgmr.msra.gmra.mrb[48].mxu0 %v1476_v0  ;;  %v1446_v10 = vmax.f32 %v1402_v3, 0.0 }
 0x5c1   : > { %v1397_v9 = vadd.f32 %v2432_v51, %v1396_v8  ;;  %v1444_v12 = vmax.f32 %v1394_v5, 0.0  ;;  %2901 = vmatpush3.bf16.msra.mxu0 %v3103_v46  ;;  %v3110_v46 = vld [vmem:[#allocation5 + $0x238] sm:$0xff]  }
 0x5c2   : > { %v1447_v11 = vmax.f32 %v1405_v7, 0.0  ;;  %2902 = vmatprep.subr.bf16.mxu0 %v3104_v47 }
 0x5c3   : > { %v1445_v13 = vmax.f32 %v1397_v9, 0.0 }
 0x5c4   : > { %v1478_v14 = vpack.c.bf16 %v1447_v11, %v1446_v10 }
 0x5c5   : > { %v1477_v15 = vpack.c.bf16 %v1445_v13, %v1444_v12  ;;  %v2830_v16 = vpop.f32.mrb[40].mxu1  ;;  %2903 = vmatpush3.bf16.msra.mxu0 %v3104_v47  ;;  %v3111_v47 = vld [vmem:[#allocation5 + $0x240] sm:$0xff]  }
 0x5c6   : > { %v1418_v17 = vadd.f32 %v2830_v16, %v2432_v51  ;;  %v1409_v18 = vpop.f32.mrb[41].mxu1  ;;  %2904 = vmatprep.subr.bf16.mxu0 %v3105_v48  ;;  %2932 = vmatprep.subr.bf16.mxu1 %v3111_v47 }
 0x5c7   : > { %v1410_v19 = vadd.f32 %v2432_v51, %v1409_v18  ;;  %v2831_v20 = vpop.f32.mrb[42].mxu1  ;;  %2856 = vmatprep.mubr.bf16.mxu0 %v1477_v15 }
 0x5c8   : > { %v1421_v21 = vadd.f32 %v2831_v20, %v2432_v51  ;;  %v1412_v22 = vpop.f32.mrb[43].mxu1  ;;  %2857 = vmatmul.mubr.bf16.gmra.mrb[52].mxu0 %v1478_v14  ;;  %v1450_v24 = vmax.f32 %v1418_v17, 0.0 }
 0x5c9   : > { %v1413_v23 = vadd.f32 %v2432_v51, %v1412_v22  ;;  %v1448_v26 = vmax.f32 %v1410_v19, 0.0  ;;  %2905 = vmatpush3.bf16.msra.mxu0 %v3105_v48  ;;  %v3112_v48 = vld [vmem:[#allocation5 + $0x248] sm:$0xff]  }
 0x5ca   : > { %v1451_v25 = vmax.f32 %v1421_v21, 0.0  ;;  %2906 = vmatprep.subr.bf16.mxu0 %v3106_v49 }
 0x5cb   : > { %v1449_v27 = vmax.f32 %v1413_v23, 0.0 }
 0x5cc   : > { %v1480_v28 = vpack.c.bf16 %v1451_v25, %v1450_v24 }
 0x5cd   : > { %v1479_v29 = vpack.c.bf16 %v1449_v27, %v1448_v26  ;;  %v2834_v30 = vpop.f32.mrb[44].mxu1  ;;  %2907 = vmatpush3.bf16.msra.mxu0 %v3106_v49  ;;  %v3113_v49 = vld [vmem:[#allocation5 + $0x250] sm:$0xff]  }
 0x5ce   : > { %v1434_v31 = vadd.f32 %v2834_v30, %v2432_v51  ;;  %v1425_v32 = vpop.f32.mrb[45].mxu1  ;;  %2908 = vmatprep.subr.bf16.mxu0 %v3107_v50 }
 0x5cf   : > { %v1426_v33 = vadd.f32 %v2432_v51, %v1425_v32  ;;  %v2835_v34 = vpop.f32.mrb[46].mxu1  ;;  %2860 = vmatprep.mubr.bf16.mxu0 %v1479_v29 }
 0x5d0   : > { %v1437_v35 = vadd.f32 %v2835_v34, %v2432_v51  ;;  %v1428_v36 = vpop.f32.mrb[47].mxu1  ;;  %2861 = vmatmul.mubr.bf16.gmra.mrb[56].mxu0 %v1480_v28  ;;  %v1454_v38 = vmax.f32 %v1434_v31, 0.0 }
 0x5d1   : > { %v1429_v37 = vadd.f32 %v2432_v51, %v1428_v36  ;;  %v1452_v40 = vmax.f32 %v1426_v33, 0.0  ;;  %v3108_v51 = vld [vmem:[#allocation5 + $0x228] sm:$0xff]   ;;  %2909 = vmatpush3.bf16.msra.mxu0 %v3107_v50  ;;  %v3114_v50 = vld [vmem:[#allocation5 + $0x258] sm:$0xff]  }
 0x5d2   : > { %v1455_v39 = vmax.f32 %v1437_v35, 0.0  ;;  %2910 = vmatprep.subr.bf16.mxu0 %v3108_v51 }
 0x5d3   : > { %v1453_v41 = vmax.f32 %v1429_v37, 0.0 }
 0x5d4   : > { %v1482_v42 = vpack.c.bf16 %v1455_v39, %v1454_v38 }
 0x5d5   : > { %v1481_v43 = vpack.c.bf16 %v1453_v41, %v1452_v40  ;;  %2911 = vmatpush3.bf16.msra.mxu0 %v3108_v51  ;;  %v3115_v51 = vld [vmem:[#allocation5 + $0x260] sm:$0xff]  }
 0x5d6   : > { %2912 = vmatprep.subr.bf16.mxu0 %v3109_v45 }
 0x5d7   : > { %2864 = vmatprep.mubr.bf16.mxu0 %v1481_v43 }
 0x5d8   : > { %2865 = vmatmul.mubr.bf16.gmra.mrb[60].mxu0 %v1482_v42 }
 0x5d9   : > { %2913 = vmatpush3.bf16.msra.mxu0 %v3109_v45 }
 0x5da   : > { %2914 = vmatprep.subr.bf16.mxu0 %v3110_v46 }
 0x5dd   : > { %2915 = vmatpush3.bf16.msra.mxu0 %v3110_v46  ;;  %v3117_v46 = vld [vmem:[#allocation5 + $0x270] sm:$0xff]  }
 0x693   : > { %v2854_v53 = vpop.f32.mrb[48].mxu0 }
 0x694   : > { %v1580_v54 = vadd.f32 %v2854_v53, %v2441_v52  ;;  %v1571_v55 = vpop.f32.mrb[49].mxu0  ;;  %v2450_v53 = vld [vmem:[#allocation7 + $0x7] ss:$0 sm:$0xff] }
 0x695   : > { %v1572_v56 = vadd.f32 %v2441_v52, %v1571_v55  ;;  %v2855_v57 = vpop.f32.mrb[50].mxu0 }
 0x696   : > { %v1583_v58 = vadd.f32 %v2855_v57, %v2441_v52  ;;  %v1574_v59 = vpop.f32.mrb[51].mxu0  ;;  %v1636_v61 = vmax.f32 %v1580_v54, 0.0 }
 0x697   : > { %v1575_v60 = vadd.f32 %v2441_v52, %v1574_v59  ;;  %v1634_v63 = vmax.f32 %v1572_v56, 0.0 }
 0x698   : > { %v1637_v62 = vmax.f32 %v1583_v58, 0.0 }
 0x699   : > { %v1635_v0 = vmax.f32 %v1575_v60, 0.0 }
 0x69a   : > { %v1670_v1 = vpack.c.bf16 %v1637_v62, %v1636_v61 }
 0x69b   : > { %v1669_v2 = vpack.c.bf16 %v1635_v0, %v1634_v63  ;;  %v2858_v3 = vpop.f32.mrb[52].mxu0 }
 0x69c   : > { %v1596_v4 = vadd.f32 %v2858_v3, %v2441_v52  ;;  %v1587_v5 = vpop.f32.mrb[53].mxu0 }
 0x69d   : > { %v1588_v6 = vadd.f32 %v2441_v52, %v1587_v5  ;;  %v2859_v7 = vpop.f32.mrb[54].mxu0  ;;  %2884 = vmatprep.mubr.bf16.mxu1 %v1669_v2 }
 0x69e   : > { %v1599_v8 = vadd.f32 %v2859_v7, %v2441_v52  ;;  %v1590_v9 = vpop.f32.mrb[55].mxu0  ;;  %2885 = vmatmul.mubr.bf16.vlgmr.msra.gmra.mrb[48].mxu1 %v1670_v1  ;;  %v1640_v11 = vmax.f32 %v1596_v4, 0.0 }
 0x69f   : > { %v1591_v10 = vadd.f32 %v2441_v52, %v1590_v9  ;;  %v1638_v13 = vmax.f32 %v1588_v6, 0.0  ;;  %2933 = vmatpush3.bf16.msra.mxu1 %v3111_v47  ;;  %v3118_v47 = vld [vmem:[#allocation5 + $0x278] sm:$0xff]  }
 0x6a0   : > { %v1641_v12 = vmax.f32 %v1599_v8, 0.0  ;;  %2934 = vmatprep.subr.bf16.mxu1 %v3112_v48 }
 0x6a1   : > { %v1639_v14 = vmax.f32 %v1591_v10, 0.0 }
 0x6a2   : > { %v1672_v15 = vpack.c.bf16 %v1641_v12, %v1640_v11 }
 0x6a3   : > { %v1671_v16 = vpack.c.bf16 %v1639_v14, %v1638_v13  ;;  %v2862_v17 = vpop.f32.mrb[56].mxu0  ;;  %2935 = vmatpush3.bf16.msra.mxu1 %v3112_v48  ;;  %v2459_v48 = vld [vmem:[#allocation7 + $0x8] ss:$0 sm:$0xff] }
 0x6a4   : > { %v1612_v18 = vadd.f32 %v2862_v17, %v2441_v52  ;;  %v1603_v19 = vpop.f32.mrb[57].mxu0  ;;  %2936 = vmatprep.subr.bf16.mxu1 %v3113_v49 }
 0x6a5   : > { %v1604_v20 = vadd.f32 %v2441_v52, %v1603_v19  ;;  %v2863_v21 = vpop.f32.mrb[58].mxu0  ;;  %2888 = vmatprep.mubr.bf16.mxu1 %v1671_v16 }
 0x6a6   : > { %v1615_v22 = vadd.f32 %v2863_v21, %v2441_v52  ;;  %v1606_v23 = vpop.f32.mrb[59].mxu0  ;;  %2889 = vmatmul.mubr.bf16.gmra.mrb[52].mxu1 %v1672_v15  ;;  %v1644_v25 = vmax.f32 %v1612_v18, 0.0 }
 0x6a7   : > { %v1607_v24 = vadd.f32 %v2441_v52, %v1606_v23  ;;  %v1642_v27 = vmax.f32 %v1604_v20, 0.0  ;;  %2937 = vmatpush3.bf16.msra.mxu1 %v3113_v49 }
 0x6a8   : > { %v1645_v26 = vmax.f32 %v1615_v22, 0.0  ;;  %2938 = vmatprep.subr.bf16.mxu1 %v3114_v50 }
 0x6a9   : > { %v1643_v28 = vmax.f32 %v1607_v24, 0.0 }
 0x6aa   : > { %v1674_v29 = vpack.c.bf16 %v1645_v26, %v1644_v25 }
 0x6ab   : > { %v1673_v30 = vpack.c.bf16 %v1643_v28, %v1642_v27  ;;  %v2866_v31 = vpop.f32.mrb[60].mxu0  ;;  %2939 = vmatpush3.bf16.msra.mxu1 %v3114_v50 }
 0x6ac   : > { %v1628_v32 = vadd.f32 %v2866_v31, %v2441_v52  ;;  %v1619_v33 = vpop.f32.mrb[61].mxu0  ;;  %2940 = vmatprep.subr.bf16.mxu1 %v3115_v51 }
 0x6ad   : > { %v1620_v34 = vadd.f32 %v2441_v52, %v1619_v33  ;;  %v2867_v35 = vpop.f32.mrb[62].mxu0  ;;  %2892 = vmatprep.mubr.bf16.mxu1 %v1673_v30 }
 0x6ae   : > { %v1631_v36 = vadd.f32 %v2867_v35, %v2441_v52  ;;  %v1622_v37 = vpop.f32.mrb[63].mxu0  ;;  %2893 = vmatmul.mubr.bf16.gmra.mrb[56].mxu1 %v1674_v29  ;;  %v1648_v39 = vmax.f32 %v1628_v32, 0.0 }
 0x6af   : > { %v1623_v38 = vadd.f32 %v2441_v52, %v1622_v37  ;;  %v1646_v41 = vmax.f32 %v1620_v34, 0.0  ;;  %v3116_v52 = vld [vmem:[#allocation5 + $0x268] sm:$0xff]   ;;  %2941 = vmatpush3.bf16.msra.mxu1 %v3115_v51 }
 0x6b0   : > { %v1649_v40 = vmax.f32 %v1631_v36, 0.0  ;;  %2942 = vmatprep.subr.bf16.mxu1 %v3116_v52 }
 0x6b1   : > { %v1647_v42 = vmax.f32 %v1623_v38, 0.0 }
 0x6b2   : > { %v1676_v43 = vpack.c.bf16 %v1649_v40, %v1648_v39 }
 0x6b3   : > { %v1675_v44 = vpack.c.bf16 %v1647_v42, %v1646_v41  ;;  %2943 = vmatpush3.bf16.msra.mxu1 %v3116_v52 }
 0x6b4   : > { %2944 = vmatprep.subr.bf16.mxu1 %v3117_v46 }
 0x6b5   : > { %2896 = vmatprep.mubr.bf16.mxu1 %v1675_v44 }
 0x6b6   : > { %2897 = vmatmul.mubr.bf16.gmra.mrb[60].mxu1 %v1676_v43 }
 0x6b7   : > { %2945 = vmatpush3.bf16.msra.mxu1 %v3117_v46 }
 0x6b8   : > { %2946 = vmatprep.subr.bf16.mxu1 %v3118_v47 }
 0x6bb   : > { %2947 = vmatpush3.bf16.msra.mxu1 %v3118_v47 }
 0x771   : > { %v2886_v54 = vpop.f32.mrb[48].mxu1 }
 0x772   : > { %v1774_v55 = vadd.f32 %v2886_v54, %v2450_v53  ;;  %v1765_v56 = vpop.f32.mrb[49].mxu1 }
 0x773   : > { %v1766_v57 = vadd.f32 %v2450_v53, %v1765_v56  ;;  %v2887_v58 = vpop.f32.mrb[50].mxu1 }
 0x774   : > { %v1777_v59 = vadd.f32 %v2887_v58, %v2450_v53  ;;  %v1768_v60 = vpop.f32.mrb[51].mxu1  ;;  %v1830_v62 = vmax.f32 %v1774_v55, 0.0 }
 0x775   : > { %v1769_v61 = vadd.f32 %v2450_v53, %v1768_v60  ;;  %v1828_v0 = vmax.f32 %v1766_v57, 0.0 }
 0x776   : > { %v1831_v63 = vmax.f32 %v1777_v59, 0.0 }
 0x777   : > { %v1829_v1 = vmax.f32 %v1769_v61, 0.0 }
 0x778   : > { %v1864_v2 = vpack.c.bf16 %v1831_v63, %v1830_v62 }
 0x779   : > { %v1863_v3 = vpack.c.bf16 %v1829_v1, %v1828_v0  ;;  %v2890_v4 = vpop.f32.mrb[52].mxu1 }
 0x77a   : > { %v1790_v5 = vadd.f32 %v2890_v4, %v2450_v53  ;;  %v1781_v6 = vpop.f32.mrb[53].mxu1 }
 0x77b   : > { %v1782_v7 = vadd.f32 %v2450_v53, %v1781_v6  ;;  %v2891_v8 = vpop.f32.mrb[54].mxu1  ;;  %2916 = vmatprep.mubr.bf16.mxu0 %v1863_v3 }
 0x77c   : > { %v1793_v9 = vadd.f32 %v2891_v8, %v2450_v53  ;;  %v1784_v10 = vpop.f32.mrb[55].mxu1  ;;  %2917 = vmatmul.mubr.bf16.vlgmr.msra.gmra.mrb[64].mxu0 %v1864_v2  ;;  %v1834_v12 = vmax.f32 %v1790_v5, 0.0 }
 0x77d   : > { %v1785_v11 = vadd.f32 %v2450_v53, %v1784_v10  ;;  %v1832_v14 = vmax.f32 %v1782_v7, 0.0 }
 0x77e   : > { %v1835_v13 = vmax.f32 %v1793_v9, 0.0 }
 0x77f   : > { %v1833_v15 = vmax.f32 %v1785_v11, 0.0 }
 0x780   : > { %v1866_v16 = vpack.c.bf16 %v1835_v13, %v1834_v12 }
 0x781   : > { %v1865_v17 = vpack.c.bf16 %v1833_v15, %v1832_v14  ;;  %v2894_v18 = vpop.f32.mrb[56].mxu1 }
 0x782   : > { %v1806_v19 = vadd.f32 %v2894_v18, %v2450_v53  ;;  %v1797_v20 = vpop.f32.mrb[57].mxu1 }
 0x783   : > { %v1798_v21 = vadd.f32 %v2450_v53, %v1797_v20  ;;  %v2895_v22 = vpop.f32.mrb[58].mxu1  ;;  %2920 = vmatprep.mubr.bf16.mxu0 %v1865_v17 }
 0x784   : > { %v1809_v23 = vadd.f32 %v2895_v22, %v2450_v53  ;;  %v1800_v24 = vpop.f32.mrb[59].mxu1  ;;  %2921 = vmatmul.mubr.bf16.gmra.mrb[68].mxu0 %v1866_v16  ;;  %v1838_v26 = vmax.f32 %v1806_v19, 0.0 }
 0x785   : > { %v1801_v25 = vadd.f32 %v2450_v53, %v1800_v24  ;;  %v1836_v28 = vmax.f32 %v1798_v21, 0.0 }
 0x786   : > { %v1839_v27 = vmax.f32 %v1809_v23, 0.0 }
 0x787   : > { %v1837_v29 = vmax.f32 %v1801_v25, 0.0 }
 0x788   : > { %v1868_v30 = vpack.c.bf16 %v1839_v27, %v1838_v26 }
 0x789   : > { %v1867_v31 = vpack.c.bf16 %v1837_v29, %v1836_v28  ;;  %v2898_v32 = vpop.f32.mrb[60].mxu1 }
 0x78a   : > { %v1822_v33 = vadd.f32 %v2898_v32, %v2450_v53  ;;  %v1813_v34 = vpop.f32.mrb[61].mxu1 }
 0x78b   : > { %v1814_v35 = vadd.f32 %v2450_v53, %v1813_v34  ;;  %v2899_v36 = vpop.f32.mrb[62].mxu1  ;;  %2924 = vmatprep.mubr.bf16.mxu0 %v1867_v31 }
 0x78c   : > { %v1825_v37 = vadd.f32 %v2899_v36, %v2450_v53  ;;  %v1816_v38 = vpop.f32.mrb[63].mxu1  ;;  %2925 = vmatmul.mubr.bf16.gmra.mrb[72].mxu0 %v1868_v30  ;;  %v1842_v40 = vmax.f32 %v1822_v33, 0.0 }
 0x78d   : > { %v1817_v39 = vadd.f32 %v2450_v53, %v1816_v38  ;;  %v1840_v42 = vmax.f32 %v1814_v35, 0.0 }
 0x78e   : > { %v1843_v41 = vmax.f32 %v1825_v37, 0.0 }
 0x78f   : > { %v1841_v43 = vmax.f32 %v1817_v39, 0.0 }
 0x790   : > { %v1870_v44 = vpack.c.bf16 %v1843_v41, %v1842_v40  ;;  %v2468_v41 = vld [vmem:[#allocation7 + $0x9] ss:$0 sm:$0xff] }
 0x791   : > { %v1869_v45 = vpack.c.bf16 %v1841_v43, %v1840_v42 }
 0x793   : > { %2928 = vmatprep.mubr.bf16.mxu0 %v1869_v45 }
 0x794   : > { %2929 = vmatmul.mubr.bf16.gmra.mrb[76].mxu0 %v1870_v44 }
 0x84f   : > { %v2918_v49 = vpop.f32.mrb[64].mxu0 }
 0x850   : > { %v1968_v50 = vadd.f32 %v2918_v49, %v2459_v48  ;;  %v1959_v51 = vpop.f32.mrb[65].mxu0 }
 0x851   : > { %v1960_v52 = vadd.f32 %v2459_v48, %v1959_v51  ;;  %v2919_v53 = vpop.f32.mrb[66].mxu0 }
 0x852   : > { %v1971_v54 = vadd.f32 %v2919_v53, %v2459_v48  ;;  %v1962_v55 = vpop.f32.mrb[67].mxu0  ;;  %v2024_v57 = vmax.f32 %v1968_v50, 0.0 }
 0x853   : > { %v1963_v56 = vadd.f32 %v2459_v48, %v1962_v55  ;;  %v2022_v59 = vmax.f32 %v1960_v52, 0.0 }
 0x854   : > { %v2025_v58 = vmax.f32 %v1971_v54, 0.0 }
 0x855   : > { %v2023_v60 = vmax.f32 %v1963_v56, 0.0 }
 0x856   : > { %v2058_v61 = vpack.c.bf16 %v2025_v58, %v2024_v57 }
 0x857   : > { %v2057_v62 = vpack.c.bf16 %v2023_v60, %v2022_v59  ;;  %v2922_v63 = vpop.f32.mrb[68].mxu0 }
 0x858   : > { %v1984_v0 = vadd.f32 %v2922_v63, %v2459_v48  ;;  %v1975_v1 = vpop.f32.mrb[69].mxu0 }
 0x859   : > { %v1976_v2 = vadd.f32 %v2459_v48, %v1975_v1  ;;  %v2923_v3 = vpop.f32.mrb[70].mxu0  ;;  %2948 = vmatprep.mubr.bf16.mxu1 %v2057_v62 }
 0x85a   : > { %v1987_v4 = vadd.f32 %v2923_v3, %v2459_v48  ;;  %v1978_v5 = vpop.f32.mrb[71].mxu0  ;;  %2949 = vmatmul.mubr.bf16.vlgmr.msra.gmra.mrb[64].mxu1 %v2058_v61  ;;  %v2028_v7 = vmax.f32 %v1984_v0, 0.0 }
 0x85b   : > { %v1979_v6 = vadd.f32 %v2459_v48, %v1978_v5  ;;  %v2026_v9 = vmax.f32 %v1976_v2, 0.0 }
 0x85c   : > { %v2029_v8 = vmax.f32 %v1987_v4, 0.0 }
 0x85d   : > { %v2027_v10 = vmax.f32 %v1979_v6, 0.0 }
 0x85e   : > { %v2060_v11 = vpack.c.bf16 %v2029_v8, %v2028_v7 }
 0x85f   : > { %v2059_v12 = vpack.c.bf16 %v2027_v10, %v2026_v9  ;;  %v2926_v13 = vpop.f32.mrb[72].mxu0 }
 0x860   : > { %v2000_v14 = vadd.f32 %v2926_v13, %v2459_v48  ;;  %v1991_v15 = vpop.f32.mrb[73].mxu0 }
 0x861   : > { %v1992_v16 = vadd.f32 %v2459_v48, %v1991_v15  ;;  %v2927_v17 = vpop.f32.mrb[74].mxu0  ;;  %2952 = vmatprep.mubr.bf16.mxu1 %v2059_v12 }
 0x862   : > { %v2003_v18 = vadd.f32 %v2927_v17, %v2459_v48  ;;  %v1994_v19 = vpop.f32.mrb[75].mxu0  ;;  %2953 = vmatmul.mubr.bf16.gmra.mrb[68].mxu1 %v2060_v11  ;;  %v2032_v21 = vmax.f32 %v2000_v14, 0.0 }
 0x863   : > { %v1995_v20 = vadd.f32 %v2459_v48, %v1994_v19  ;;  %v2030_v23 = vmax.f32 %v1992_v16, 0.0 }
 0x864   : > { %v2033_v22 = vmax.f32 %v2003_v18, 0.0 }
 0x865   : > { %v2031_v24 = vmax.f32 %v1995_v20, 0.0 }
 0x866   : > { %v2062_v25 = vpack.c.bf16 %v2033_v22, %v2032_v21 }
 0x867   : > { %v2061_v26 = vpack.c.bf16 %v2031_v24, %v2030_v23  ;;  %v2930_v27 = vpop.f32.mrb[76].mxu0 }
 0x868   : > { %v2016_v28 = vadd.f32 %v2930_v27, %v2459_v48  ;;  %v2007_v29 = vpop.f32.mrb[77].mxu0 }
 0x869   : > { %v2008_v30 = vadd.f32 %v2459_v48, %v2007_v29  ;;  %v2931_v31 = vpop.f32.mrb[78].mxu0  ;;  %2956 = vmatprep.mubr.bf16.mxu1 %v2061_v26 }
 0x86a   : > { %v2019_v32 = vadd.f32 %v2931_v31, %v2459_v48  ;;  %v2010_v33 = vpop.f32.mrb[79].mxu0  ;;  %2957 = vmatmul.mubr.bf16.gmra.mrb[72].mxu1 %v2062_v25  ;;  %v2036_v35 = vmax.f32 %v2016_v28, 0.0 }
 0x86b   : > { %v2011_v34 = vadd.f32 %v2459_v48, %v2010_v33  ;;  %v2034_v37 = vmax.f32 %v2008_v30, 0.0 }
 0x86c   : > { %v2037_v36 = vmax.f32 %v2019_v32, 0.0 }
 0x86d   : > { %v2035_v38 = vmax.f32 %v2011_v34, 0.0 }
 0x86e   : > { %v2064_v39 = vpack.c.bf16 %v2037_v36, %v2036_v35 }
 0x86f   : > { %v2063_v40 = vpack.c.bf16 %v2035_v38, %v2034_v37 }
 0x871   : > { %2960 = vmatprep.mubr.bf16.mxu1 %v2063_v40 }
 0x872   : > { %2961 = vmatmul.mubr.bf16.gmra.mrb[76].mxu1 %v2064_v39 }
 0x92d   : > { %v2950_v42 = vpop.f32.mrb[64].mxu1 }
 0x92e   : > { %v2162_v43 = vadd.f32 %v2950_v42, %v2468_v41  ;;  %v2153_v44 = vpop.f32.mrb[65].mxu1 }
 0x92f   : > { %v2154_v45 = vadd.f32 %v2468_v41, %v2153_v44  ;;  %v2951_v46 = vpop.f32.mrb[66].mxu1 }
 0x930   : > { %2218 = vst [vmem:[%s3560_s7 + $0x10] sm:$0xff] %v2162_v43  ;;  %v2165_v47 = vadd.f32 %v2951_v46, %v2468_v41  ;;  %v2156_v48 = vpop.f32.mrb[67].mxu1 }
 0x931   : > { %2216 = vst [vmem:[%s3560_s7] sm:$0xff] %v2154_v45  ;;  %v2157_v49 = vadd.f32 %v2468_v41, %v2156_v48 }
 0x932   : > { %2219 = vst [vmem:[%s3560_s7 + $0x18] sm:$0xff] %v2165_v47 }
 0x933   : > { %2217 = vst [vmem:[%s3560_s7 + $0x8] sm:$0xff] %v2157_v49 }
 0x935   : > { %v2954_v50 = vpop.f32.mrb[68].mxu1 }
 0x936   : > { %v2178_v51 = vadd.f32 %v2954_v50, %v2468_v41  ;;  %v2169_v52 = vpop.f32.mrb[69].mxu1 }
 0x937   : > { %v2170_v53 = vadd.f32 %v2468_v41, %v2169_v52  ;;  %v2955_v54 = vpop.f32.mrb[70].mxu1 }
 0x938   : > { %2222 = vst [vmem:[%s3560_s7 + $0x30] sm:$0xff] %v2178_v51  ;;  %v2181_v55 = vadd.f32 %v2955_v54, %v2468_v41  ;;  %v2172_v56 = vpop.f32.mrb[71].mxu1 }
 0x939   : > { %2220 = vst [vmem:[%s3560_s7 + $0x20] sm:$0xff] %v2170_v53  ;;  %v2173_v57 = vadd.f32 %v2468_v41, %v2172_v56 }
 0x93a   : > { %2223 = vst [vmem:[%s3560_s7 + $0x38] sm:$0xff] %v2181_v55 }
 0x93b   : > { %2221 = vst [vmem:[%s3560_s7 + $0x28] sm:$0xff] %v2173_v57 }
 0x93d   : > { %v2958_v58 = vpop.f32.mrb[72].mxu1 }
 0x93e   : > { %v2194_v59 = vadd.f32 %v2958_v58, %v2468_v41  ;;  %v2185_v60 = vpop.f32.mrb[73].mxu1 }
 0x93f   : > { %v2186_v61 = vadd.f32 %v2468_v41, %v2185_v60  ;;  %v2959_v62 = vpop.f32.mrb[74].mxu1 }
 0x940   : > { %2226 = vst [vmem:[%s3560_s7 + $0x50] sm:$0xff] %v2194_v59  ;;  %v2197_v63 = vadd.f32 %v2959_v62, %v2468_v41  ;;  %v2188_v0 = vpop.f32.mrb[75].mxu1 }
 0x941   : > { %2224 = vst [vmem:[%s3560_s7 + $0x40] sm:$0xff] %v2186_v61  ;;  %v2189_v1 = vadd.f32 %v2468_v41, %v2188_v0 }
 0x942   : > { %2227 = vst [vmem:[%s3560_s7 + $0x58] sm:$0xff] %v2197_v63 }
 0x943   : > { %2225 = vst [vmem:[%s3560_s7 + $0x48] sm:$0xff] %v2189_v1 }
 0x945   : > { %v2962_v2 = vpop.f32.mrb[76].mxu1 }
 0x946   : > { %v2210_v3 = vadd.f32 %v2962_v2, %v2468_v41  ;;  %v2201_v4 = vpop.f32.mrb[77].mxu1 }
 0x947   : > { %v2202_v5 = vadd.f32 %v2468_v41, %v2201_v4  ;;  %v2963_v6 = vpop.f32.mrb[78].mxu1 }
 0x948   : > { %2230 = vst [vmem:[%s3560_s7 + $0x70] sm:$0xff] %v2210_v3  ;;  %v2213_v7 = vadd.f32 %v2963_v6, %v2468_v41  ;;  %v2204_v8 = vpop.f32.mrb[79].mxu1 }
 0x949   : > { %2228 = vst [vmem:[%s3560_s7 + $0x60] sm:$0xff] %v2202_v5  ;;  %v2205_v9 = vadd.f32 %v2468_v41, %v2204_v8 }
 0x94a   : > { %2231 = vst [vmem:[%s3560_s7 + $0x78] sm:$0xff] %v2213_v7 }
 0x94b   : > { %2229 = vst [vmem:[%s3560_s7 + $0x68] sm:$0xff] %v2205_v9 }
 0x94c   : > { %3218 = shalt.err (!%p3215_p13)
}
 0x94d   : > { %s3219_s13 = scalar_lea.hbm %s3580_s29, 2048  ;;  %s3223_s30 = scalar_lea.hbm %s3633_s4, 4096 }
 0x94e   : > { %p3220_p6 = scmp.ne.s32.totalorder %s3580_s29, %s3219_s13  ;;  %p3224_p7 = scmp.lt.u32.totalorder %s3580_s29, %s3633_s4 }
 0x94f   : > { %p3225_p8 = scmp.lt.u32.totalorder %s3223_s30, %s3219_s13  ;;  %p3227_p0 = scmp.lt.u32.totalorder %s3219_s13, %s3580_s29 }
 0x950   : > { %p3221_p10 = pnand %p3220_p6, %p3647_p1 }
 0x951   : > { %p3226_p11 = por %p3225_p8, %p3224_p7 }
 0x952   : > { %p3222_p4 = pneg %p3221_p10 }
 0x953   : > { %p3228_p3 = por %p3227_p0, %p3226_p11 }
 0x955   : > { %p3229_p5 = pnand %p3228_p3, %p3222_p4 }
 0x957   : > { %3232 = shalt.err (!%p3229_p5)
}
 0x958   : > { %s3287_s7 = smov 128   ;;  %s3288_s24 = smov 8  }
 0x959   : > { %2974 = dma.vmem_to_hbm [thread:$0]  (%p3647_p1), %s3582_s26, 2048, %s3580_s29, %s2238_s19, %s3287_s7, %s3287_s7, %s3288_s24  }
 0x95a PF: > { %s2278_s28 = sand.u32 1, %s3263_s15   ;;  %p3648_p9 = scmp.ne.s32.totalorder %s3638_s22, 0 }
 0x95b   : > { %p3649_p12 = scmp.ge.s32.totalorder %s3275_s18, 2  ;;  %s2279_s27 = scalar_lea.sflag [#allocation4], %s2278_s28 }
 0x95d   : > { %p2988_p2 = pnand %p3649_p12, %p3648_p9 }
 0x95f   : > { %3258 = dma.done.wait (!%p2988_p2), %s2279_s27, 2048  }
 0x960   : > { %3260 = vsyncadd (!%p2988_p2), %s2279_s27, 4294965248  ;;  %p19_p13 = scmp.ge.s32.totalorder %s3424_s11, 4   ;;  %s3650_s15 = smov %s3267_s16 }
 0x961   : > { %s3651_s16 = smov %s3271_s17  ;;  %s3652_s17 = smov %s3433_s14 }
 0x962   : > { %s3653_s18 = smov %s3424_s11  ;;  %21 = sbr.rel (!%p19_p13) target bundleno = 6 (0x6), region = 115 }
 0x969   :  { %2284 = vsyncpa [#allocation3], 1 }
 0x96a   :  { %2286 = vsyncpa [#allocation3 + $0x1], 1 }
 0x96b   :  { %2287 = vsyncpa [#allocation6], 1 }
 0x96c   :  { %2288 = vsyncpa [#allocation4], 1 }
 0x96d   :  { %2290 = vsyncpa [#allocation4 + $0x1], 1 }

</bundles_post_ra>
